<compile_context>
chip_gen: v7x
topology: tpu7x:2x2x1
jax: 0.10.0
libtpu: 0.0.40
codegen_flags: <defaults>
</compile_context>

<pallas_src>
import functools

import numpy as np
import jax
import jax.numpy as jnp
from jax import lax
from jax.experimental import pallas as pl
from jax.experimental.pallas import tpu as pltpu


_AGG_CHUNK = 128   # t-row chunk (sublane axis) for the masked max


# --------------------------------------------------------------------------- #
# Fused Pallas kernel: one grid step == one K iteration of the PyTorch loop.
# --------------------------------------------------------------------------- #
def _fused_kernel(state0_hbm, fmaskT_hbm, bmaskT_hbm, fdw_hbm, bdw_hbm,
                  finv_ref, binv_ref, act_ref,
                  wt_ref, bt_ref,
                  wfcx_ref, wfca_ref, bfc_ref,
                  wbcx_ref, wbca_ref, bbc_ref,
                  wee_ref, wef_ref, web_ref, be_ref,
                  out_ref,
                  state_ref, t_ref, fmaskT_ref, bmaskT_ref, fdw_ref, bdw_ref,
                  copy_sem):
    k = pl.program_id(0)
    last = pl.num_programs(0) - 1

    n_pad = fmaskT_ref.shape[1]         # padded node count
    e_pad = fdw_ref.shape[0]            # padded edge count
    cols = fmaskT_ref.shape[0]          # = n_pad + e_pad (t rows seen by each side)
    feat = state_ref.shape[1]

    # One-time staging: big constant operands come in as raw HBM refs and are
    # DMA'd into single-buffered VMEM scratch at k == 0.  They persist across
    # the K loop: no per-step refetch, no per-step dtype cast, no pipeline
    # double-buffering of the large arrays.
    @pl.when(k == 0)
    def _():
        copies = (
            pltpu.make_async_copy(state0_hbm, state_ref, copy_sem.at[0]),
            pltpu.make_async_copy(fmaskT_hbm, fmaskT_ref, copy_sem.at[1]),
            pltpu.make_async_copy(bmaskT_hbm, bmaskT_ref, copy_sem.at[2]),
            pltpu.make_async_copy(fdw_hbm, fdw_ref, copy_sem.at[3]),
            pltpu.make_async_copy(bdw_hbm, bdw_ref, copy_sem.at[4]),
        )
        for c in copies:
            c.start()
        for c in copies:
            c.wait()

    state = state_ref[...]              # [2*n_pad + e_pad, feat], rows = [fw|edge|bw]
    fw_old = state[0:n_pad, :]
    e_old = state[n_pad:n_pad + e_pad, :]
    bw_old = state[n_pad + e_pad:, :]

    # shared `transform` (dropout == identity) + ReLU: one tall matmul over the
    # whole stacked state.  Parked in VMEM scratch so the chunked aggregation
    # can slice it with dynamic sublane offsets.
    t_ref[...] = jnp.maximum(
        jnp.dot(state, wt_ref[...], preferred_element_type=jnp.float32)
        + bt_ref[...], 0.0)

    # masked max-pool over neighbours + contributing edges.  Masks are stored
    # TRANSPOSED ([t_row, node]) so the chunk axis is the sublane axis and the
    # reduction runs over the leading (untiled) dim = pure elementwise max.
    # t >= 0 post-ReLU and masks are exactly {0,1}, so max(mask * t) with a 0
    # sentinel equals the max over the gathered rows (0 for empty neighbourhoods).
    chunk = min(_AGG_CHUNK, cols)       # cols is a multiple of 8, so chunk is too
    n_full = cols // chunk
    rem = cols - n_full * chunk

    def masked_max(mask_ref, row_off):
        def chunk_max(acc, start, width):
            m = mask_ref[pl.ds(start, width), :]              # [width, n_pad]
            t = t_ref[pl.ds(row_off + start, width), :]       # [width, feat]
            blk = m[:, :, None] * t[:, None, :]               # [width, n_pad, feat]
            return jnp.maximum(acc, jnp.max(blk, axis=0))
        acc = jnp.zeros((n_pad, feat), jnp.float32)
        if n_full > 0:
            def body(c, a):                                   # bounded live range
                return chunk_max(a, pl.multiple_of(c * chunk, 8), chunk)
            acc = lax.fori_loop(0, n_full, body, acc)
        if rem > 0:                                           # static tail chunk
            acc = chunk_max(acc, n_full * chunk, rem)
        return acc

    # fw side sees t rows [fw | edge] (offset 0), bw side sees [edge | bw]
    # (offset n_pad); the transposed mask row layouts match (built in wrapper).
    agg_fw = masked_max(fmaskT_ref, 0)
    agg_bw = masked_max(bmaskT_ref, n_pad)

    # fc / bc on concat([x, agg], -1) == x @ W[:F] + agg @ W[F:]; weights are
    # pre-split in the wrapper so no in-kernel weight slicing or lane concat.
    fw_new = jnp.maximum(
        jnp.dot(fw_old, wfcx_ref[...], preferred_element_type=jnp.float32)
        + jnp.dot(agg_fw, wfca_ref[...], preferred_element_type=jnp.float32)
        + bfc_ref[...], 0.0)
    bw_new = jnp.maximum(
        jnp.dot(bw_old, wbcx_ref[...], preferred_element_type=jnp.float32)
        + jnp.dot(agg_bw, wbca_ref[...], preferred_element_type=jnp.float32)
        + bbc_ref[...], 0.0)

    state_ref[0:n_pad, :] = fw_new
    state_ref[n_pad + e_pad:, :] = bw_new

    # output slab written only on the final iteration; its block index is
    # constant over k so it is flushed to HBM exactly once.
    @pl.when(k == last)
    def _():
        out_ref[0, :, :] = fw_new
        out_ref[1, :, :] = bw_new

    # edge update, skipped on the last iteration (matches the PyTorch code).
    @pl.when(k < last)
    def _():
        # mean of gathered dependents = (count-matrix @ nodes) * (1/count);
        # inverse counts are precomputed in the wrapper.
        # TODO(synk): torch yields NaN on an empty bw dependent list; guarded here.
        fmean = jnp.dot(fdw_ref[...], fw_new,
                        preferred_element_type=jnp.float32) * finv_ref[...]
        bmean = jnp.dot(bdw_ref[...], bw_new,
                        preferred_element_type=jnp.float32) * binv_ref[...]
        eh = jnp.maximum(
            jnp.dot(e_old, wee_ref[...], preferred_element_type=jnp.float32)
            + jnp.dot(fmean, wef_ref[...], preferred_element_type=jnp.float32)
            + jnp.dot(bmean, web_ref[...], preferred_element_type=jnp.float32)
            + be_ref[...], 0.0)
        act = act_ref[...] > 0.5                    # fw_edgedepend > 0
        state_ref[n_pad:n_pad + e_pad, :] = jnp.where(act, eh, e_old)


# --------------------------------------------------------------------------- #
# JAX glue: dense mask construction, padding, weight pre-splitting, pallas_call
# --------------------------------------------------------------------------- #
def _any_spec():
    return pl.BlockSpec(memory_space=pl.ANY)


def _full_spec(shape):
    zeros = (0,) * len(shape)
    return pl.BlockSpec(shape, lambda k: zeros)


def _round_up(x, m):
    return ((x + m - 1) // m) * m


def _pad_rows(x, rows):
    pad = rows - x.shape[0]
    if pad == 0:
        return x
    return jnp.pad(x, ((0, pad),) + ((0, 0),) * (x.ndim - 1))


def _build_node_masks(adj, end, edgeid, edgeend, gate_end, n_pad, e_pad):
    deg = adj.shape[1]
    nvalid = (jnp.arange(deg)[None, :] < end[:, None]).astype(jnp.float32)
    node_mask = jnp.max(
        jax.nn.one_hot(adj, n_pad, dtype=jnp.float32) * nvalid[..., None], axis=1)
    me = edgeid.shape[1]
    evalid = ((jnp.arange(me)[None, :] < edgeend[:, None])
              & (gate_end[:, None] > 0)).astype(jnp.float32)
    edge_mask = jnp.max(
        jax.nn.one_hot(edgeid, e_pad, dtype=jnp.float32) * evalid[..., None], axis=1)
    return node_mask, edge_mask          # [N, n_pad], [N, e_pad], values in {0,1}


def _build_dep_weights(dep, n_pad):
    cnt = jnp.sum(dep > -1, axis=1)
    dd = dep.shape[1]
    valid = (jnp.arange(dd)[None, :] < cnt[:, None]).astype(jnp.float32)
    w = jnp.sum(jax.nn.one_hot(dep, n_pad, dtype=jnp.float32) * valid[..., None], axis=1)
    return w, cnt                        # [E, n_pad] small-int weights, [E]


def _vmem_limit_bytes():
    # Size the scoped VMEM limit per generation: ~96 MiB on v5e/v6e (128 MiB
    # physical), ~48 MiB on v7x (64 MiB physical).  Conservative fallback.
    try:
        cap = int(pltpu.get_tpu_info().vmem_capacity_bytes)
    except Exception:
        cap = 64 * 1024 * 1024
    return max(32 * 1024 * 1024, min((cap * 3) // 4, 100 * 1024 * 1024))


@functools.partial(jax.jit, static_argnums=(1,))
def node_emblayer_forward(params, K, fw_input, bw_input, edge_embs,
                          fw_adj, bw_adj, bw_end, fw_end,
                          fw_edgeid, bw_edgeid, bw_edgeend, fw_edgeend,
                          fw_edgedep, bw_edgedep):
    N, F = fw_input.shape
    E = edge_embs.shape[0]
    n_pad = _round_up(N, 8)
    e_pad = _round_up(E, 8)
    rows = 2 * n_pad + e_pad
    cols = n_pad + e_pad

    # dense {0,1} masks, f32 in HBM (DMA'd to VMEM exactly once -> no per-step
    # cast work in the kernel), stored TRANSPOSED as [t_row, node].
    fnm, fem = _build_node_masks(fw_adj, fw_end, fw_edgeid, fw_edgeend,
                                 fw_edgeend, n_pad, e_pad)
    # NOTE: original torch code gates the bw edge gather on fw_edgeend > 0 (reproduced).
    bnm, bem = _build_node_masks(bw_adj, bw_end, bw_edgeid, bw_edgeend,
                                 fw_edgeend, n_pad, e_pad)
    fmaskT = _pad_rows(jnp.concatenate([fnm, fem], axis=1), n_pad).T   # [cols, n_pad]
    bmaskT = _pad_rows(jnp.concatenate([bem, bnm], axis=1), n_pad).T   # [cols, n_pad]

    fdw, fcnt = _build_dep_weights(fw_edgedep, n_pad)
    bdw, bcnt = _build_dep_weights(bw_edgedep, n_pad)
    fdw = _pad_rows(fdw, e_pad)                                        # [e_pad, n_pad] f32
    bdw = _pad_rows(bdw, e_pad)
    fcnt_f = _pad_rows(fcnt[:, None].astype(jnp.float32), e_pad)
    bcnt_f = _pad_rows(bcnt[:, None].astype(jnp.float32), e_pad)
    finv = 1.0 / jnp.maximum(fcnt_f, 1.0)      # inverse counts: multiply in-kernel
    binv = 1.0 / jnp.maximum(bcnt_f, 1.0)
    act = (fcnt_f > 0).astype(jnp.float32)

    state0 = jnp.concatenate([
        _pad_rows(fw_input.astype(jnp.float32), n_pad),
        _pad_rows(edge_embs.astype(jnp.float32), e_pad),
        _pad_rows(bw_input.astype(jnp.float32), n_pad)], axis=0)       # [rows, F]

    wfc, wbc, we = params["wfc"], params["wbc"], params["we"]
    hbm_args = (state0, fmaskT, bmaskT, fdw, bdw)                      # staged once
    small_args = (finv, binv, act,
                  params["wt"], params["bt"],
                  wfc[:F, :], wfc[F:, :], params["bfc"],
                  wbc[:F, :], wbc[F:, :], params["bbc"],
                  we[:F, :], we[F:2 * F, :], we[2 * F:, :], params["be"])
    args = hbm_args + small_args

    # advisory cost estimate so XLA schedules surrounding ops around this call
    flops_k = 2 * rows * F * F + 4 * cols * n_pad * F + 8 * n_pad * F * F
    flops_e = 4 * e_pad * n_pad * F + 6 * e_pad * F * F
    flops = K * flops_k + max(K - 1, 0) * flops_e
    bytes_acc = sum(int(np.prod(a.shape)) * a.dtype.itemsize for a in args) \
        + 2 * n_pad * F * 4
    cost = pl.CostEstimate(flops=int(flops), transcendentals=0,
                           bytes_accessed=int(bytes_acc))

    out = pl.pallas_call(
        _fused_kernel,
        grid=(K,),
        in_specs=[_any_spec() for _ in hbm_args]
                 + [_full_spec(a.shape) for a in small_args],
        out_specs=_full_spec((2, n_pad, F)),
        out_shape=jax.ShapeDtypeStruct((2, n_pad, F), jnp.float32),
        scratch_shapes=[
            pltpu.VMEM((rows, F), jnp.float32),        # persistent stacked state
            pltpu.VMEM((rows, F), jnp.float32),        # transformed state t
            pltpu.VMEM((cols, n_pad), jnp.float32),    # fw mask (transposed)
            pltpu.VMEM((cols, n_pad), jnp.float32),    # bw mask (transposed)
            pltpu.VMEM((e_pad, n_pad), jnp.float32),   # fw dep-count weights
            pltpu.VMEM((e_pad, n_pad), jnp.float32),   # bw dep-count weights
            pltpu.SemaphoreType.DMA((5,)),             # staging-copy semaphores
        ],
        compiler_params=pltpu.CompilerParams(
            dimension_semantics=("arbitrary",),
            vmem_limit_bytes=_vmem_limit_bytes()),
        cost_estimate=cost,
    )(*args)
    return out[0, :N, :], out[1, :N, :]


# --------------------------------------------------------------------------- #
# Pure numpy reference mirroring the PyTorch forward (eval mode)
# --------------------------------------------------------------------------- #
def _reference_forward(params, K, fw_input, bw_input, edge_embs,
                       fw_adj, bw_adj, bw_end, fw_end,
                       fw_edgeid, bw_edgeid, bw_edgeend, fw_edgeend,
                       fw_edgedep, bw_edgedep):
    p = {k: np.asarray(v) for k, v in params.items()}
    relu = lambda x: np.maximum(x, 0.0)
    lin = lambda x, w, b: x @ w + b
    fw = np.asarray(fw_input).copy()
    bw = np.asarray(bw_input).copy()
    e = np.asarray(edge_embs).copy()
    fw_adj, bw_adj = np.asarray(fw_adj), np.asarray(bw_adj)
    fw_end, bw_end = np.asarray(fw_end), np.asarray(bw_end)
    fw_eid, bw_eid = np.asarray(fw_edgeid), np.asarray(bw_edgeid)
    fw_eend, bw_eend = np.asarray(fw_edgeend), np.asarray(bw_edgeend)
    fw_dep, bw_dep = np.asarray(fw_edgedep), np.asarray(bw_edgedep)
    N = fw.shape[0]
    E = e.shape[0]
    F = p["wt"].shape[0]
    fw_dcnt = np.sum(fw_dep > -1, axis=1)
    bw_dcnt = np.sum(bw_dep > -1, axis=1)

    for k in range(K):
        fw_h = np.zeros((N, 2 * F), np.float32)
        bw_h = np.zeros((N, 2 * F), np.float32)
        for i in range(N):
            rows = fw[fw_adj[i, :int(fw_end[i])]]
            if int(fw_eend[i]) > 0:
                rows = np.concatenate([e[fw_eid[i, :int(fw_eend[i])]], rows], 0)
            rows = relu(lin(rows, p["wt"], p["bt"]))
            fw_h[i] = np.concatenate([fw[i], rows.max(axis=0)])

            rows = bw[bw_adj[i, :int(bw_end[i])]]
            if int(fw_eend[i]) > 0:
                rows = np.concatenate([e[bw_eid[i, :int(bw_eend[i])]], rows], 0)
            rows = relu(lin(rows, p["wt"], p["bt"]))
            bw_h[i] = np.concatenate([bw[i], rows.max(axis=0)])
        fw = relu(lin(fw_h, p["wfc"], p["bfc"]))
        bw = relu(lin(bw_h, p["wbc"], p["bbc"]))
        if k < K - 1:
            new_e = e.copy()
            for i in range(E):
                if fw_dcnt[i] > 0:
                    fmean = fw[fw_dep[i, :int(fw_dcnt[i])]].mean(axis=0)
                    bmean = bw[bw_dep[i, :int(bw_dcnt[i])]].mean(axis=0)
                    cat = np.concatenate([e[i], fmean, bmean])[None, :]
                    new_e[i] = relu(lin(cat, p["we"], p["be"]))[0]
            e = new_e
    return fw, bw


# --------------------------------------------------------------------------- #
# Demo
# --------------------------------------------------------------------------- #
if __name__ == "__main__":
    N, E = 8, 8                 # nodes, edges
    F = 16                      # out_features
    IN_F = 2 * F                # in_features
    MAX_DEG, MAX_EID, MAX_DEP = 4, 3, 3
    K = 2                       # opt.Node_K

    keys = jax.random.split(jax.random.PRNGKey(0), 16)
    fw_input = jax.random.normal(keys[0], (N, F), jnp.float32)
    bw_input = jax.random.normal(keys[1], (N, F), jnp.float32)
    edge_embs = jax.random.normal(keys[2], (E, F), jnp.float32)
    fw_adj = jax.random.randint(keys[3], (N, MAX_DEG), 0, N)
    bw_adj = jax.random.randint(keys[4], (N, MAX_DEG), 0, N)
    fw_end = jax.random.randint(keys[5], (N,), 1, MAX_DEG + 1)
    bw_end = jax.random.randint(keys[6], (N,), 1, MAX_DEG + 1)
    fw_edgeid = jax.random.randint(keys[7], (N, MAX_EID), 0, E)
    bw_edgeid = jax.random.randint(keys[8], (N, MAX_EID), 0, E)
    fw_edgeend = jax.random.randint(keys[9], (N,), 0, MAX_EID + 1)
    bw_edgeend = jax.random.randint(keys[10], (N,), 0, MAX_EID + 1)

    # per-edge dependent node lists, trailing -1 padding (as the module assumes)
    fw_dep_cnt = jax.random.randint(keys[11], (E,), 0, MAX_DEP + 1)
    bw_dep_cnt = jax.random.randint(keys[12], (E,), 1, MAX_DEP + 1)  # >=1: avoid torch NaN path

    def make_dep(k, cnt):
        vals = jax.random.randint(k, (E, MAX_DEP), 0, N)
        col = jnp.arange(MAX_DEP)[None, :]
        return jnp.where(col < cnt[:, None], vals, -1)

    fw_edgedep = make_dep(keys[13], fw_dep_cnt)
    bw_edgedep = make_dep(keys[14], bw_dep_cnt)

    # deterministic parameters (PyTorch Linear shapes, stored transposed [in, out])
    def init_lin(k, fan_in, fan_out):
        kw, kb = jax.random.split(k)
        s = 1.0 / np.sqrt(fan_in)
        w = jax.random.uniform(kw, (fan_in, fan_out), jnp.float32, -s, s)
        b = jax.random.uniform(kb, (1, fan_out), jnp.float32, -s, s)
        return w, b

    pkeys = jax.random.split(jax.random.PRNGKey(42), 4)
    wfc, bfc = init_lin(pkeys[0], IN_F, F)      # self.fc
    wbc, bbc = init_lin(pkeys[1], IN_F, F)      # self.bc
    we, be = init_lin(pkeys[2], 3 * F, F)       # self.edge
    wt, bt = init_lin(pkeys[3], F, F)           # self.transform[1]
    params = dict(wt=wt, bt=bt, wfc=wfc, bfc=bfc, wbc=wbc, bbc=bbc, we=we, be=be)

    args = (fw_input, bw_input, edge_embs,
            fw_adj, bw_adj, bw_end, fw_end,
            fw_edgeid, bw_edgeid, bw_edgeend, fw_edgeend,
            fw_edgedep, bw_edgedep)

    fw_out, bw_out = node_emblayer_forward(params, K, *args)
    jax.block_until_ready((fw_out, bw_out))

    fw_ref, bw_ref = _reference_forward(params, K, *args)
    np.testing.assert_allclose(np.asarray(fw_out), fw_ref, rtol=1e-4, atol=1e-4)
    np.testing.assert_allclose(np.asarray(bw_out), bw_ref, rtol=1e-4, atol=1e-4)

    print("KERNEL_OK")
</pallas_src>

<mosaic_0001>
module attributes {stable_mosaic.version = 11 : i64} {
  func.func @_fused_kernel(%arg0: i32, %arg1: memref<24x16xf32, #tpu.memory_space<any>>, %arg2: memref<16x8xf32, #tpu.memory_space<any>>, %arg3: memref<16x8xf32, #tpu.memory_space<any>>, %arg4: memref<8x8xf32, #tpu.memory_space<any>>, %arg5: memref<8x8xf32, #tpu.memory_space<any>>, %arg6: memref<8x1xf32, #tpu.memory_space<vmem>>, %arg7: memref<8x1xf32, #tpu.memory_space<vmem>>, %arg8: memref<8x1xf32, #tpu.memory_space<vmem>>, %arg9: memref<16x16xf32, #tpu.memory_space<vmem>>, %arg10: memref<1x16xf32, #tpu.memory_space<vmem>>, %arg11: memref<16x16xf32, #tpu.memory_space<vmem>>, %arg12: memref<16x16xf32, #tpu.memory_space<vmem>>, %arg13: memref<1x16xf32, #tpu.memory_space<vmem>>, %arg14: memref<16x16xf32, #tpu.memory_space<vmem>>, %arg15: memref<16x16xf32, #tpu.memory_space<vmem>>, %arg16: memref<1x16xf32, #tpu.memory_space<vmem>>, %arg17: memref<16x16xf32, #tpu.memory_space<vmem>>, %arg18: memref<16x16xf32, #tpu.memory_space<vmem>>, %arg19: memref<16x16xf32, #tpu.memory_space<vmem>>, %arg20: memref<1x16xf32, #tpu.memory_space<vmem>>, %arg21: memref<2x8x16xf32, #tpu.memory_space<vmem>>, %arg22: memref<24x16xf32, #tpu.memory_space<vmem>>, %arg23: memref<24x16xf32, #tpu.memory_space<vmem>>, %arg24: memref<16x8xf32, #tpu.memory_space<vmem>>, %arg25: memref<16x8xf32, #tpu.memory_space<vmem>>, %arg26: memref<8x8xf32, #tpu.memory_space<vmem>>, %arg27: memref<8x8xf32, #tpu.memory_space<vmem>>, %arg28: memref<5x!tpu.dma_semaphore, #tpu.memory_space<semaphore_mem>>) attributes {dimension_semantics = [#tpu.dimension_semantics<arbitrary>], iteration_bounds = array<i64: 2>, scalar_prefetch = 0 : i64, scratch_operands = 7 : i64, tpu.core_type = #tpu.core_type<tc>, window_params = [{}, {}, {}, {}, {}, {pipeline_mode = #tpu.pipeline_mode<synchronous>, transform_indices = @transform_5, window_bounds = array<i64: 8, 1>}, {pipeline_mode = #tpu.pipeline_mode<synchronous>, transform_indices = @transform_6, window_bounds = array<i64: 8, 1>}, {pipeline_mode = #tpu.pipeline_mode<synchronous>, transform_indices = @transform_7, window_bounds = array<i64: 8, 1>}, {pipeline_mode = #tpu.pipeline_mode<synchronous>, transform_indices = @transform_8, window_bounds = array<i64: 16, 16>}, {pipeline_mode = #tpu.pipeline_mode<synchronous>, transform_indices = @transform_9, window_bounds = array<i64: 1, 16>}, {pipeline_mode = #tpu.pipeline_mode<synchronous>, transform_indices = @transform_10, window_bounds = array<i64: 16, 16>}, {pipeline_mode = #tpu.pipeline_mode<synchronous>, transform_indices = @transform_11, window_bounds = array<i64: 16, 16>}, {pipeline_mode = #tpu.pipeline_mode<synchronous>, transform_indices = @transform_12, window_bounds = array<i64: 1, 16>}, {pipeline_mode = #tpu.pipeline_mode<synchronous>, transform_indices = @transform_13, window_bounds = array<i64: 16, 16>}, {pipeline_mode = #tpu.pipeline_mode<synchronous>, transform_indices = @transform_14, window_bounds = array<i64: 16, 16>}, {pipeline_mode = #tpu.pipeline_mode<synchronous>, transform_indices = @transform_15, window_bounds = array<i64: 1, 16>}, {pipeline_mode = #tpu.pipeline_mode<synchronous>, transform_indices = @transform_16, window_bounds = array<i64: 16, 16>}, {pipeline_mode = #tpu.pipeline_mode<synchronous>, transform_indices = @transform_17, window_bounds = array<i64: 16, 16>}, {pipeline_mode = #tpu.pipeline_mode<synchronous>, transform_indices = @transform_18, window_bounds = array<i64: 16, 16>}, {pipeline_mode = #tpu.pipeline_mode<synchronous>, transform_indices = @transform_19, window_bounds = array<i64: 1, 16>}, {pipeline_mode = #tpu.pipeline_mode<synchronous>, transform_indices = @transform_20, window_bounds = array<i64: 2, 8, 16>}]} {
    %c0_i32 = arith.constant 0 : i32
    %0 = arith.cmpi eq, %arg0, %c0_i32 : i32
    %1 = arith.extui %0 : i1 to i32
    %c0_i32_0 = arith.constant 0 : i32
    %2 = arith.cmpi ne, %1, %c0_i32_0 : i32
    scf.if %2 {
      %c0_i32_47 = arith.constant 0 : i32
      %73 = tpu.memref_slice %arg28[%c0_i32_47] : memref<5x!tpu.dma_semaphore, #tpu.memory_space<semaphore_mem>> -> memref<1x!tpu.dma_semaphore, #tpu.memory_space<semaphore_mem>>
      %74 = tpu.memref_squeeze %73 : memref<1x!tpu.dma_semaphore, #tpu.memory_space<semaphore_mem>> -> memref<!tpu.dma_semaphore, #tpu.memory_space<semaphore_mem>>
      tpu.enqueue_dma source(%arg1 : memref<24x16xf32, #tpu.memory_space<any>>) target(%arg22 : memref<24x16xf32, #tpu.memory_space<vmem>>) target_semaphore(%74 : memref<!tpu.dma_semaphore, #tpu.memory_space<semaphore_mem>>)
      %c1_i32_48 = arith.constant 1 : i32
      %75 = tpu.memref_slice %arg28[%c1_i32_48] : memref<5x!tpu.dma_semaphore, #tpu.memory_space<semaphore_mem>> -> memref<1x!tpu.dma_semaphore, #tpu.memory_space<semaphore_mem>>
      %76 = tpu.memref_squeeze %75 : memref<1x!tpu.dma_semaphore, #tpu.memory_space<semaphore_mem>> -> memref<!tpu.dma_semaphore, #tpu.memory_space<semaphore_mem>>
      tpu.enqueue_dma source(%arg2 : memref<16x8xf32, #tpu.memory_space<any>>) target(%arg24 : memref<16x8xf32, #tpu.memory_space<vmem>>) target_semaphore(%76 : memref<!tpu.dma_semaphore, #tpu.memory_space<semaphore_mem>>)
      %c2_i32 = arith.constant 2 : i32
      %77 = tpu.memref_slice %arg28[%c2_i32] : memref<5x!tpu.dma_semaphore, #tpu.memory_space<semaphore_mem>> -> memref<1x!tpu.dma_semaphore, #tpu.memory_space<semaphore_mem>>
      %78 = tpu.memref_squeeze %77 : memref<1x!tpu.dma_semaphore, #tpu.memory_space<semaphore_mem>> -> memref<!tpu.dma_semaphore, #tpu.memory_space<semaphore_mem>>
      tpu.enqueue_dma source(%arg3 : memref<16x8xf32, #tpu.memory_space<any>>) target(%arg25 : memref<16x8xf32, #tpu.memory_space<vmem>>) target_semaphore(%78 : memref<!tpu.dma_semaphore, #tpu.memory_space<semaphore_mem>>)
      %c3_i32 = arith.constant 3 : i32
      %79 = tpu.memref_slice %arg28[%c3_i32] : memref<5x!tpu.dma_semaphore, #tpu.memory_space<semaphore_mem>> -> memref<1x!tpu.dma_semaphore, #tpu.memory_space<semaphore_mem>>
      %80 = tpu.memref_squeeze %79 : memref<1x!tpu.dma_semaphore, #tpu.memory_space<semaphore_mem>> -> memref<!tpu.dma_semaphore, #tpu.memory_space<semaphore_mem>>
      tpu.enqueue_dma source(%arg4 : memref<8x8xf32, #tpu.memory_space<any>>) target(%arg26 : memref<8x8xf32, #tpu.memory_space<vmem>>) target_semaphore(%80 : memref<!tpu.dma_semaphore, #tpu.memory_space<semaphore_mem>>)
      %c4_i32 = arith.constant 4 : i32
      %81 = tpu.memref_slice %arg28[%c4_i32] : memref<5x!tpu.dma_semaphore, #tpu.memory_space<semaphore_mem>> -> memref<1x!tpu.dma_semaphore, #tpu.memory_space<semaphore_mem>>
      %82 = tpu.memref_squeeze %81 : memref<1x!tpu.dma_semaphore, #tpu.memory_space<semaphore_mem>> -> memref<!tpu.dma_semaphore, #tpu.memory_space<semaphore_mem>>
      tpu.enqueue_dma source(%arg5 : memref<8x8xf32, #tpu.memory_space<any>>) target(%arg27 : memref<8x8xf32, #tpu.memory_space<vmem>>) target_semaphore(%82 : memref<!tpu.dma_semaphore, #tpu.memory_space<semaphore_mem>>)
      %c0_i32_49 = arith.constant 0 : i32
      %83 = tpu.memref_slice %arg28[%c0_i32_49] : memref<5x!tpu.dma_semaphore, #tpu.memory_space<semaphore_mem>> -> memref<1x!tpu.dma_semaphore, #tpu.memory_space<semaphore_mem>>
      %84 = tpu.memref_squeeze %83 : memref<1x!tpu.dma_semaphore, #tpu.memory_space<semaphore_mem>> -> memref<!tpu.dma_semaphore, #tpu.memory_space<semaphore_mem>>
      tpu.wait_dma2 semaphore(%84 : memref<!tpu.dma_semaphore, #tpu.memory_space<semaphore_mem>>) src(%arg1 : memref<24x16xf32, #tpu.memory_space<any>>) dst(%arg22 : memref<24x16xf32, #tpu.memory_space<vmem>>)
      %c1_i32_50 = arith.constant 1 : i32
      %85 = tpu.memref_slice %arg28[%c1_i32_50] : memref<5x!tpu.dma_semaphore, #tpu.memory_space<semaphore_mem>> -> memref<1x!tpu.dma_semaphore, #tpu.memory_space<semaphore_mem>>
      %86 = tpu.memref_squeeze %85 : memref<1x!tpu.dma_semaphore, #tpu.memory_space<semaphore_mem>> -> memref<!tpu.dma_semaphore, #tpu.memory_space<semaphore_mem>>
      tpu.wait_dma2 semaphore(%86 : memref<!tpu.dma_semaphore, #tpu.memory_space<semaphore_mem>>) src(%arg2 : memref<16x8xf32, #tpu.memory_space<any>>) dst(%arg24 : memref<16x8xf32, #tpu.memory_space<vmem>>)
      %c2_i32_51 = arith.constant 2 : i32
      %87 = tpu.memref_slice %arg28[%c2_i32_51] : memref<5x!tpu.dma_semaphore, #tpu.memory_space<semaphore_mem>> -> memref<1x!tpu.dma_semaphore, #tpu.memory_space<semaphore_mem>>
      %88 = tpu.memref_squeeze %87 : memref<1x!tpu.dma_semaphore, #tpu.memory_space<semaphore_mem>> -> memref<!tpu.dma_semaphore, #tpu.memory_space<semaphore_mem>>
      tpu.wait_dma2 semaphore(%88 : memref<!tpu.dma_semaphore, #tpu.memory_space<semaphore_mem>>) src(%arg3 : memref<16x8xf32, #tpu.memory_space<any>>) dst(%arg25 : memref<16x8xf32, #tpu.memory_space<vmem>>)
      %c3_i32_52 = arith.constant 3 : i32
      %89 = tpu.memref_slice %arg28[%c3_i32_52] : memref<5x!tpu.dma_semaphore, #tpu.memory_space<semaphore_mem>> -> memref<1x!tpu.dma_semaphore, #tpu.memory_space<semaphore_mem>>
      %90 = tpu.memref_squeeze %89 : memref<1x!tpu.dma_semaphore, #tpu.memory_space<semaphore_mem>> -> memref<!tpu.dma_semaphore, #tpu.memory_space<semaphore_mem>>
      tpu.wait_dma2 semaphore(%90 : memref<!tpu.dma_semaphore, #tpu.memory_space<semaphore_mem>>) src(%arg4 : memref<8x8xf32, #tpu.memory_space<any>>) dst(%arg26 : memref<8x8xf32, #tpu.memory_space<vmem>>)
      %c4_i32_53 = arith.constant 4 : i32
      %91 = tpu.memref_slice %arg28[%c4_i32_53] : memref<5x!tpu.dma_semaphore, #tpu.memory_space<semaphore_mem>> -> memref<1x!tpu.dma_semaphore, #tpu.memory_space<semaphore_mem>>
      %92 = tpu.memref_squeeze %91 : memref<1x!tpu.dma_semaphore, #tpu.memory_space<semaphore_mem>> -> memref<!tpu.dma_semaphore, #tpu.memory_space<semaphore_mem>>
      tpu.wait_dma2 semaphore(%92 : memref<!tpu.dma_semaphore, #tpu.memory_space<semaphore_mem>>) src(%arg5 : memref<8x8xf32, #tpu.memory_space<any>>) dst(%arg27 : memref<8x8xf32, #tpu.memory_space<vmem>>)
    } else {
    }
    %c0 = arith.constant 0 : index
    %c0_1 = arith.constant 0 : index
    %3 = vector.load %arg22[%c0, %c0_1] : memref<24x16xf32, #tpu.memory_space<vmem>>, vector<24x16xf32>
    %4 = vector.extract_strided_slice %3 {offsets = [0, 0], sizes = [8, 16], strides = [1, 1]} : vector<24x16xf32> to vector<8x16xf32>
    %5 = vector.extract_strided_slice %3 {offsets = [8, 0], sizes = [8, 16], strides = [1, 1]} : vector<24x16xf32> to vector<8x16xf32>
    %6 = vector.extract_strided_slice %3 {offsets = [16, 0], sizes = [8, 16], strides = [1, 1]} : vector<24x16xf32> to vector<8x16xf32>
    %c0_2 = arith.constant 0 : index
    %c0_3 = arith.constant 0 : index
    %7 = vector.load %arg9[%c0_2, %c0_3] : memref<16x16xf32, #tpu.memory_space<vmem>>, vector<16x16xf32>
    %cst = arith.constant dense<0.000000e+00> : vector<24x16xf32>
    %8 = tpu.matmul %3, %7, %cst {dimension_numbers = #tpu.dot_dimension_numbers<[1], [0], [0], [1], [0, 0, 1, 1], [], []>} : vector<24x16xf32>, vector<16x16xf32>, vector<24x16xf32> -> vector<24x16xf32>
    %c0_4 = arith.constant 0 : index
    %c0_5 = arith.constant 0 : index
    %9 = vector.load %arg10[%c0_4, %c0_5] : memref<1x16xf32, #tpu.memory_space<vmem>>, vector<1x16xf32>
    %10 = vector.broadcast %9 : vector<1x16xf32> to vector<24x16xf32>
    %11 = arith.addf %8, %10 : vector<24x16xf32>
    %cst_6 = arith.constant 0.000000e+00 : f32
    %12 = vector.broadcast %cst_6 : f32 to vector<24x16xf32>
    %13 = arith.maximumf %11, %12 : vector<24x16xf32>
    %c0_7 = arith.constant 0 : index
    %c0_8 = arith.constant 0 : index
    %14 = vector.load %arg23[%c0_7, %c0_8] : memref<24x16xf32, #tpu.memory_space<vmem>>, vector<24x16xf32>
    tpu.vector_store %arg23[%c0_7, %c0_8], %13 {strides = array<i32>} : memref<24x16xf32, #tpu.memory_space<vmem>>, vector<24x16xf32>,
    %cst_9 = arith.constant 0.000000e+00 : f32
    %15 = vector.broadcast %cst_9 : f32 to vector<8x16xf32>
    %c0_i32_10 = arith.constant 0 : i32
    %c16_i32 = arith.constant 16 : i32
    %16 = arith.muli %c0_i32_10, %c16_i32 : i32
    %17 = tpu.assume_multiple %16, 8 : i32
    %18 = arith.index_cast %17 : i32 to index
    %c0_11 = arith.constant 0 : index
    %19 = vector.load %arg24[%18, %c0_11] : memref<16x8xf32, #tpu.memory_space<vmem>>, vector<16x8xf32>
    %c0_i32_12 = arith.constant 0 : i32
    %20 = arith.addi %c0_i32_12, %17 : i32
    %21 = arith.index_cast %20 : i32 to index
    %c0_13 = arith.constant 0 : index
    %22 = vector.load %arg23[%21, %c0_13] : memref<24x16xf32, #tpu.memory_space<vmem>>, vector<16x16xf32>
    %23 = vector.shape_cast %19 : vector<16x8xf32> to vector<16x8x1xf32>
    %24 = vector.shape_cast %22 : vector<16x16xf32> to vector<16x1x16xf32>
    %25 = vector.broadcast %23 : vector<16x8x1xf32> to vector<16x8x16xf32>
    %26 = vector.broadcast %24 : vector<16x1x16xf32> to vector<16x8x16xf32>
    %27 = arith.mulf %25, %26 : vector<16x8x16xf32>
    %cst_14 = arith.constant dense<0xFF800000> : vector<8x16xf32>
    %28 = vector.multi_reduction <maximumf>, %27, %cst_14 [0] : vector<16x8x16xf32> to vector<8x16xf32>
    %29 = arith.maximumf %15, %28 : vector<8x16xf32>
    %c1_i32 = arith.constant 1 : i32
    %cst_15 = arith.constant 0.000000e+00 : f32
    %30 = vector.broadcast %cst_15 : f32 to vector<8x16xf32>
    %c0_i32_16 = arith.constant 0 : i32
    %c16_i32_17 = arith.constant 16 : i32
    %31 = arith.muli %c0_i32_16, %c16_i32_17 : i32
    %32 = tpu.assume_multiple %31, 8 : i32
    %33 = arith.index_cast %32 : i32 to index
    %c0_18 = arith.constant 0 : index
    %34 = vector.load %arg25[%33, %c0_18] : memref<16x8xf32, #tpu.memory_space<vmem>>, vector<16x8xf32>
    %c8_i32 = arith.constant 8 : i32
    %35 = arith.addi %c8_i32, %32 : i32
    %36 = arith.index_cast %35 : i32 to index
    %c0_19 = arith.constant 0 : index
    %37 = vector.load %arg23[%36, %c0_19] : memref<24x16xf32, #tpu.memory_space<vmem>>, vector<16x16xf32>
    %38 = vector.shape_cast %34 : vector<16x8xf32> to vector<16x8x1xf32>
    %39 = vector.shape_cast %37 : vector<16x16xf32> to vector<16x1x16xf32>
    %40 = vector.broadcast %38 : vector<16x8x1xf32> to vector<16x8x16xf32>
    %41 = vector.broadcast %39 : vector<16x1x16xf32> to vector<16x8x16xf32>
    %42 = arith.mulf %40, %41 : vector<16x8x16xf32>
    %cst_20 = arith.constant dense<0xFF800000> : vector<8x16xf32>
    %43 = vector.multi_reduction <maximumf>, %42, %cst_20 [0] : vector<16x8x16xf32> to vector<8x16xf32>
    %44 = arith.maximumf %30, %43 : vector<8x16xf32>
    %c1_i32_21 = arith.constant 1 : i32
    %c0_22 = arith.constant 0 : index
    %c0_23 = arith.constant 0 : index
    %45 = vector.load %arg11[%c0_22, %c0_23] : memref<16x16xf32, #tpu.memory_space<vmem>>, vector<16x16xf32>
    %cst_24 = arith.constant dense<0.000000e+00> : vector<8x16xf32>
    %46 = tpu.matmul %4, %45, %cst_24 {dimension_numbers = #tpu.dot_dimension_numbers<[1], [0], [0], [1], [0, 0, 1, 1], [], []>} : vector<8x16xf32>, vector<16x16xf32>, vector<8x16xf32> -> vector<8x16xf32>
    %c0_25 = arith.constant 0 : index
    %c0_26 = arith.constant 0 : index
    %47 = vector.load %arg12[%c0_25, %c0_26] : memref<16x16xf32, #tpu.memory_space<vmem>>, vector<16x16xf32>
    %cst_27 = arith.constant dense<0.000000e+00> : vector<8x16xf32>
    %48 = tpu.matmul %29, %47, %cst_27 {dimension_numbers = #tpu.dot_dimension_numbers<[1], [0], [0], [1], [0, 0, 1, 1], [], []>} : vector<8x16xf32>, vector<16x16xf32>, vector<8x16xf32> -> vector<8x16xf32>
    %49 = arith.addf %46, %48 : vector<8x16xf32>
    %c0_28 = arith.constant 0 : index
    %c0_29 = arith.constant 0 : index
    %50 = vector.load %arg13[%c0_28, %c0_29] : memref<1x16xf32, #tpu.memory_space<vmem>>, vector<1x16xf32>
    %51 = vector.broadcast %50 : vector<1x16xf32> to vector<8x16xf32>
    %52 = arith.addf %49, %51 : vector<8x16xf32>
    %cst_30 = arith.constant 0.000000e+00 : f32
    %53 = vector.broadcast %cst_30 : f32 to vector<8x16xf32>
    %54 = arith.maximumf %52, %53 : vector<8x16xf32>
    %c0_31 = arith.constant 0 : index
    %c0_32 = arith.constant 0 : index
    %55 = vector.load %arg14[%c0_31, %c0_32] : memref<16x16xf32, #tpu.memory_space<vmem>>, vector<16x16xf32>
    %cst_33 = arith.constant dense<0.000000e+00> : vector<8x16xf32>
    %56 = tpu.matmul %6, %55, %cst_33 {dimension_numbers = #tpu.dot_dimension_numbers<[1], [0], [0], [1], [0, 0, 1, 1], [], []>} : vector<8x16xf32>, vector<16x16xf32>, vector<8x16xf32> -> vector<8x16xf32>
    %c0_34 = arith.constant 0 : index
    %c0_35 = arith.constant 0 : index
    %57 = vector.load %arg15[%c0_34, %c0_35] : memref<16x16xf32, #tpu.memory_space<vmem>>, vector<16x16xf32>
    %cst_36 = arith.constant dense<0.000000e+00> : vector<8x16xf32>
    %58 = tpu.matmul %44, %57, %cst_36 {dimension_numbers = #tpu.dot_dimension_numbers<[1], [0], [0], [1], [0, 0, 1, 1], [], []>} : vector<8x16xf32>, vector<16x16xf32>, vector<8x16xf32> -> vector<8x16xf32>
    %59 = arith.addf %56, %58 : vector<8x16xf32>
    %c0_37 = arith.constant 0 : index
    %c0_38 = arith.constant 0 : index
    %60 = vector.load %arg16[%c0_37, %c0_38] : memref<1x16xf32, #tpu.memory_space<vmem>>, vector<1x16xf32>
    %61 = vector.broadcast %60 : vector<1x16xf32> to vector<8x16xf32>
    %62 = arith.addf %59, %61 : vector<8x16xf32>
    %cst_39 = arith.constant 0.000000e+00 : f32
    %63 = vector.broadcast %cst_39 : f32 to vector<8x16xf32>
    %64 = arith.maximumf %62, %63 : vector<8x16xf32>
    %c0_40 = arith.constant 0 : index
    %c0_41 = arith.constant 0 : index
    %65 = vector.load %arg22[%c0_40, %c0_41] : memref<24x16xf32, #tpu.memory_space<vmem>>, vector<8x16xf32>
    tpu.vector_store %arg22[%c0_40, %c0_41], %54 {strides = array<i32>} : memref<24x16xf32, #tpu.memory_space<vmem>>, vector<8x16xf32>,
    %c16 = arith.constant 16 : index
    %c0_42 = arith.constant 0 : index
    %66 = vector.load %arg22[%c16, %c0_42] : memref<24x16xf32, #tpu.memory_space<vmem>>, vector<8x16xf32>
    tpu.vector_store %arg22[%c16, %c0_42], %64 {strides = array<i32>} : memref<24x16xf32, #tpu.memory_space<vmem>>, vector<8x16xf32>,
    %c1_i32_43 = arith.constant 1 : i32
    %67 = arith.cmpi eq, %arg0, %c1_i32_43 : i32
    %68 = arith.extui %67 : i1 to i32
    %c0_i32_44 = arith.constant 0 : i32
    %69 = arith.cmpi ne, %68, %c0_i32_44 : i32
    scf.if %69 {
      %c0_47 = arith.constant 0 : index
      %c0_48 = arith.constant 0 : index
      %c0_49 = arith.constant 0 : index
      %73 = vector.load %arg21[%c0_47, %c0_48, %c0_49] : memref<2x8x16xf32, #tpu.memory_space<vmem>>, vector<1x8x16xf32>
      %74 = vector.shape_cast %73 : vector<1x8x16xf32> to vector<8x16xf32>
      %75 = vector.shape_cast %54 : vector<8x16xf32> to vector<1x8x16xf32>
      tpu.vector_store %arg21[%c0_47, %c0_48, %c0_49], %75 {strides = array<i32>} : memref<2x8x16xf32, #tpu.memory_space<vmem>>, vector<1x8x16xf32>,
      %c1 = arith.constant 1 : index
      %c0_50 = arith.constant 0 : index
      %c0_51 = arith.constant 0 : index
      %76 = vector.load %arg21[%c1, %c0_50, %c0_51] : memref<2x8x16xf32, #tpu.memory_space<vmem>>, vector<1x8x16xf32>
      %77 = vector.shape_cast %76 : vector<1x8x16xf32> to vector<8x16xf32>
      %78 = vector.shape_cast %64 : vector<8x16xf32> to vector<1x8x16xf32>
      tpu.vector_store %arg21[%c1, %c0_50, %c0_51], %78 {strides = array<i32>} : memref<2x8x16xf32, #tpu.memory_space<vmem>>, vector<1x8x16xf32>,
    } else {
    }
    %c1_i32_45 = arith.constant 1 : i32
    %70 = arith.cmpi slt, %arg0, %c1_i32_45 : i32
    %71 = arith.extui %70 : i1 to i32
    %c0_i32_46 = arith.constant 0 : i32
    %72 = arith.cmpi ne, %71, %c0_i32_46 : i32
    scf.if %72 {
      %c0_47 = arith.constant 0 : index
      %c0_48 = arith.constant 0 : index
      %73 = vector.load %arg26[%c0_47, %c0_48] : memref<8x8xf32, #tpu.memory_space<vmem>>, vector<8x8xf32>
      %cst_49 = arith.constant dense<0.000000e+00> : vector<8x16xf32>
      %74 = tpu.matmul %73, %54, %cst_49 {dimension_numbers = #tpu.dot_dimension_numbers<[1], [0], [0], [1], [0, 0, 1, 1], [], []>} : vector<8x8xf32>, vector<8x16xf32>, vector<8x16xf32> -> vector<8x16xf32>
      %c0_50 = arith.constant 0 : index
      %c0_51 = arith.constant 0 : index
      %75 = vector.load %arg6[%c0_50, %c0_51] : memref<8x1xf32, #tpu.memory_space<vmem>>, vector<8x1xf32>
      %76 = vector.broadcast %75 : vector<8x1xf32> to vector<8x16xf32>
      %77 = arith.mulf %74, %76 : vector<8x16xf32>
      %c0_52 = arith.constant 0 : index
      %c0_53 = arith.constant 0 : index
      %78 = vector.load %arg27[%c0_52, %c0_53] : memref<8x8xf32, #tpu.memory_space<vmem>>, vector<8x8xf32>
      %cst_54 = arith.constant dense<0.000000e+00> : vector<8x16xf32>
      %79 = tpu.matmul %78, %64, %cst_54 {dimension_numbers = #tpu.dot_dimension_numbers<[1], [0], [0], [1], [0, 0, 1, 1], [], []>} : vector<8x8xf32>, vector<8x16xf32>, vector<8x16xf32> -> vector<8x16xf32>
      %c0_55 = arith.constant 0 : index
      %c0_56 = arith.constant 0 : index
      %80 = vector.load %arg7[%c0_55, %c0_56] : memref<8x1xf32, #tpu.memory_space<vmem>>, vector<8x1xf32>
      %81 = vector.broadcast %80 : vector<8x1xf32> to vector<8x16xf32>
      %82 = arith.mulf %79, %81 : vector<8x16xf32>
      %c0_57 = arith.constant 0 : index
      %c0_58 = arith.constant 0 : index
      %83 = vector.load %arg17[%c0_57, %c0_58] : memref<16x16xf32, #tpu.memory_space<vmem>>, vector<16x16xf32>
      %cst_59 = arith.constant dense<0.000000e+00> : vector<8x16xf32>
      %84 = tpu.matmul %5, %83, %cst_59 {dimension_numbers = #tpu.dot_dimension_numbers<[1], [0], [0], [1], [0, 0, 1, 1], [], []>} : vector<8x16xf32>, vector<16x16xf32>, vector<8x16xf32> -> vector<8x16xf32>
      %c0_60 = arith.constant 0 : index
      %c0_61 = arith.constant 0 : index
      %85 = vector.load %arg18[%c0_60, %c0_61] : memref<16x16xf32, #tpu.memory_space<vmem>>, vector<16x16xf32>
      %cst_62 = arith.constant dense<0.000000e+00> : vector<8x16xf32>
      %86 = tpu.matmul %77, %85, %cst_62 {dimension_numbers = #tpu.dot_dimension_numbers<[1], [0], [0], [1], [0, 0, 1, 1], [], []>} : vector<8x16xf32>, vector<16x16xf32>, vector<8x16xf32> -> vector<8x16xf32>
      %87 = arith.addf %84, %86 : vector<8x16xf32>
      %c0_63 = arith.constant 0 : index
      %c0_64 = arith.constant 0 : index
      %88 = vector.load %arg19[%c0_63, %c0_64] : memref<16x16xf32, #tpu.memory_space<vmem>>, vector<16x16xf32>
      %cst_65 = arith.constant dense<0.000000e+00> : vector<8x16xf32>
      %89 = tpu.matmul %82, %88, %cst_65 {dimension_numbers = #tpu.dot_dimension_numbers<[1], [0], [0], [1], [0, 0, 1, 1], [], []>} : vector<8x16xf32>, vector<16x16xf32>, vector<8x16xf32> -> vector<8x16xf32>
      %90 = arith.addf %87, %89 : vector<8x16xf32>
      %c0_66 = arith.constant 0 : index
      %c0_67 = arith.constant 0 : index
      %91 = vector.load %arg20[%c0_66, %c0_67] : memref<1x16xf32, #tpu.memory_space<vmem>>, vector<1x16xf32>
      %92 = vector.broadcast %91 : vector<1x16xf32> to vector<8x16xf32>
      %93 = arith.addf %90, %92 : vector<8x16xf32>
      %cst_68 = arith.constant 0.000000e+00 : f32
      %94 = vector.broadcast %cst_68 : f32 to vector<8x16xf32>
      %95 = arith.maximumf %93, %94 : vector<8x16xf32>
      %c0_69 = arith.constant 0 : index
      %c0_70 = arith.constant 0 : index
      %96 = vector.load %arg8[%c0_69, %c0_70] : memref<8x1xf32, #tpu.memory_space<vmem>>, vector<8x1xf32>
      %cst_71 = arith.constant 5.000000e-01 : f32
      %97 = vector.broadcast %cst_71 : f32 to vector<8x1xf32>
      %98 = arith.cmpf ogt, %96, %97 : vector<8x1xf32>
      %99 = vector.shape_cast %98 : vector<8x1xi1> to vector<8x1xi1>
      %100 = vector.broadcast %99 : vector<8x1xi1> to vector<8x16xi1>
      %101 = arith.select %100, %95, %5 : vector<8x16xi1>, vector<8x16xf32>
      %c8 = arith.constant 8 : index
      %c0_72 = arith.constant 0 : index
      %102 = vector.load %arg22[%c8, %c0_72] : memref<24x16xf32, #tpu.memory_space<vmem>>, vector<8x16xf32>
      tpu.vector_store %arg22[%c8, %c0_72], %101 {strides = array<i32>} : memref<24x16xf32, #tpu.memory_space<vmem>>, vector<8x16xf32>,
    } else {
    }
    return
  }
  func.func @transform_5(%arg0: i32) -> (i32, i32) {
    %c0_i32 = arith.constant 0 : i32
    %c0_i32_0 = arith.constant 0 : i32
    %c0_i32_1 = arith.constant 0 : i32
    return %c0_i32, %c0_i32_0 : i32, i32
  }
  func.func @transform_6(%arg0: i32) -> (i32, i32) {
    %c0_i32 = arith.constant 0 : i32
    %c0_i32_0 = arith.constant 0 : i32
    %c0_i32_1 = arith.constant 0 : i32
    return %c0_i32, %c0_i32_0 : i32, i32
  }
  func.func @transform_7(%arg0: i32) -> (i32, i32) {
    %c0_i32 = arith.constant 0 : i32
    %c0_i32_0 = arith.constant 0 : i32
    %c0_i32_1 = arith.constant 0 : i32
    return %c0_i32, %c0_i32_0 : i32, i32
  }
  func.func @transform_8(%arg0: i32) -> (i32, i32) {
    %c0_i32 = arith.constant 0 : i32
    %c0_i32_0 = arith.constant 0 : i32
    %c0_i32_1 = arith.constant 0 : i32
    return %c0_i32, %c0_i32_0 : i32, i32
  }
  func.func @transform_9(%arg0: i32) -> (i32, i32) {
    %c0_i32 = arith.constant 0 : i32
    %c0_i32_0 = arith.constant 0 : i32
    %c0_i32_1 = arith.constant 0 : i32
    return %c0_i32, %c0_i32_0 : i32, i32
  }
  func.func @transform_10(%arg0: i32) -> (i32, i32) {
    %c0_i32 = arith.constant 0 : i32
    %c0_i32_0 = arith.constant 0 : i32
    %c0_i32_1 = arith.constant 0 : i32
    return %c0_i32, %c0_i32_0 : i32, i32
  }
  func.func @transform_11(%arg0: i32) -> (i32, i32) {
    %c0_i32 = arith.constant 0 : i32
    %c0_i32_0 = arith.constant 0 : i32
    %c0_i32_1 = arith.constant 0 : i32
    return %c0_i32, %c0_i32_0 : i32, i32
  }
  func.func @transform_12(%arg0: i32) -> (i32, i32) {
    %c0_i32 = arith.constant 0 : i32
    %c0_i32_0 = arith.constant 0 : i32
    %c0_i32_1 = arith.constant 0 : i32
    return %c0_i32, %c0_i32_0 : i32, i32
  }
  func.func @transform_13(%arg0: i32) -> (i32, i32) {
    %c0_i32 = arith.constant 0 : i32
    %c0_i32_0 = arith.constant 0 : i32
    %c0_i32_1 = arith.constant 0 : i32
    return %c0_i32, %c0_i32_0 : i32, i32
  }
  func.func @transform_14(%arg0: i32) -> (i32, i32) {
    %c0_i32 = arith.constant 0 : i32
    %c0_i32_0 = arith.constant 0 : i32
    %c0_i32_1 = arith.constant 0 : i32
    return %c0_i32, %c0_i32_0 : i32, i32
  }
  func.func @transform_15(%arg0: i32) -> (i32, i32) {
    %c0_i32 = arith.constant 0 : i32
    %c0_i32_0 = arith.constant 0 : i32
    %c0_i32_1 = arith.constant 0 : i32
    return %c0_i32, %c0_i32_0 : i32, i32
  }
  func.func @transform_16(%arg0: i32) -> (i32, i32) {
    %c0_i32 = arith.constant 0 : i32
    %c0_i32_0 = arith.constant 0 : i32
    %c0_i32_1 = arith.constant 0 : i32
    return %c0_i32, %c0_i32_0 : i32, i32
  }
  func.func @transform_17(%arg0: i32) -> (i32, i32) {
    %c0_i32 = arith.constant 0 : i32
    %c0_i32_0 = arith.constant 0 : i32
    %c0_i32_1 = arith.constant 0 : i32
    return %c0_i32, %c0_i32_0 : i32, i32
  }
  func.func @transform_18(%arg0: i32) -> (i32, i32) {
    %c0_i32 = arith.constant 0 : i32
    %c0_i32_0 = arith.constant 0 : i32
    %c0_i32_1 = arith.constant 0 : i32
    return %c0_i32, %c0_i32_0 : i32, i32
  }
  func.func @transform_19(%arg0: i32) -> (i32, i32) {
    %c0_i32 = arith.constant 0 : i32
    %c0_i32_0 = arith.constant 0 : i32
    %c0_i32_1 = arith.constant 0 : i32
    return %c0_i32, %c0_i32_0 : i32, i32
  }
  func.func @transform_20(%arg0: i32) -> (i32, i32, i32) {
    %c0_i32 = arith.constant 0 : i32
    %c0_i32_0 = arith.constant 0 : i32
    %c0_i32_1 = arith.constant 0 : i32
    %c0_i32_2 = arith.constant 0 : i32
    return %c0_i32, %c0_i32_0, %c0_i32_1 : i32, i32, i32
  }
}

</mosaic_0001>

<bundles_post_ra>
// kernel: node_emblayer_forward.1
= control target key start
LH: loop header
LB: loop body
LE: loop exit
PB: predicated region body
PF: predicated region fallthrough
CT: control target
= control target key end

     0   :  { %s3078_s0 = inlined_call_operand.vmem [shape: f32[24,16], index: 0, kind: input, shape index: {}]   ;;  %s3079_s1 = inlined_call_operand.vmem [shape: f32[16,8], index: 1, kind: input, shape index: {}]   ;;  %s3080_s2 = inlined_call_operand.vmem [shape: f32[16,8], index: 2, kind: input, shape index: {}]   ;;  %s3081_s3 = inlined_call_operand.vmem [shape: f32[8,8], index: 3, kind: input, shape index: {}]   ;;  %s3082_s4 = inlined_call_operand.vmem [shape: f32[8,8], index: 4, kind: input, shape index: {}]   ;;  %s3083_s5 = inlined_call_operand.vmem [shape: f32[8,1], index: 5, kind: input, shape index: {}]   ;;  %s3084_s6 = inlined_call_operand.vmem [shape: f32[8,1], index: 6, kind: input, shape index: {}]   ;;  %s3085_s7 = inlined_call_operand.vmem [shape: f32[8,1], index: 7, kind: input, shape index: {}]   ;;  %s3086_s8 = inlined_call_operand.vmem [shape: f32[16,16], index: 8, kind: input, shape index: {}]   ;;  %s3087_s9 = inlined_call_operand.vmem [shape: f32[1,16], index: 9, kind: input, shape index: {}]   ;;  %s3088_s10 = inlined_call_operand.vmem [shape: f32[16,16], index: 10, kind: input, shape index: {}]   ;;  %s3089_s11 = inlined_call_operand.vmem [shape: f32[16,16], index: 11, kind: input, shape index: {}]   ;;  %s3090_s12 = inlined_call_operand.vmem [shape: f32[1,16], index: 12, kind: input, shape index: {}]   ;;  %s3091_s13 = inlined_call_operand.vmem [shape: f32[16,16], index: 13, kind: input, shape index: {}]   ;;  %s3092_s14 = inlined_call_operand.vmem [shape: f32[16,16], index: 14, kind: input, shape index: {}]   ;;  %s3093_s15 = inlined_call_operand.vmem [shape: f32[1,16], index: 15, kind: input, shape index: {}]   ;;  %s3094_s16 = inlined_call_operand.vmem [shape: f32[16,16], index: 16, kind: input, shape index: {}]   ;;  %s3095_s17 = inlined_call_operand.vmem [shape: f32[16,16], index: 17, kind: input, shape index: {}]   ;;  %s3096_s18 = inlined_call_operand.vmem [shape: f32[16,16], index: 18, kind: input, shape index: {}]   ;;  %s3097_s19 = inlined_call_operand.vmem [shape: f32[1,16], index: 19, kind: input, shape index: {}]   ;;  %s3098_s20 = inlined_call_operand.vmem [shape: f32[2,8,16], index: 20, kind: output, shape index: {}]  }
   0x1   :  { %3105 = sst [smem:[#allocation19_spill]] %s3078_s0 }
   0x2   :  { %3106 = sst [smem:[#allocation20_spill]] %s3079_s1  ;;  %s2629_s1 = smov 0  }
   0x3   :  { %3107 = sst [smem:[#allocation21_spill]] %s3080_s2 }
   0x4   :  { %3108 = sst [smem:[#allocation22_spill]] %s3081_s3 }
   0x5   :  { %3109 = sst [smem:[#allocation23_spill]] %s3082_s4 }
   0x6 LB: > { %s2635_s22 = sadd.s32 4294967295, %s2514_s1   ;;  %p2324_p0 = scmp.ge.s32.totalorder %s2514_s1, 1  ;;  %s2514_s1 = sphi %s2629_s1, %s30_s1  }
   0x7   : > { %p427_p1 = scmp.lt.s32.totalorder %s2514_s1, 3 }
   0x9   : > { %p428_p2 = pnand %p2324_p0, %p427_p1 }
   0xa   : > { %p2325_p3 = scmp.ne.s32.totalorder (!%p428_p2), %s2635_s22, 0 }
   0xb   : > { %431 = sbr.rel (%p428_p2) target bundleno = 1018 (0x3fa), region = 80 }
  0x12   : > { %468 = sbr.rel (%p2325_p3) target bundleno = 70 (0x46), region = 84  ;;  %s3110_s2 = sld [smem:[#allocation19_spill]] (!%p2325_p3) }
  0x18   : > { %v501_v0 = vld [vmem:[%s3110_s2] sm:$0xff] (!%p2325_p3)  ;;  %v503_v1 = vld [vmem:[%s3110_s2 + $0x8] sm:$0xff] (!%p2325_p3)  ;;  %v505_v2 = vld [vmem:[%s3110_s2 + $0x10] sm:$0xff] (!%p2325_p3) }
  0x19   : > { %502 = vst [vmem:[#allocation2] sm:$0xff] %v501_v0  ;;  %504 = vst [vmem:[#allocation2 + $0x8] sm:$0xff] %v503_v1 }
  0x1a   : > { %506 = vst [vmem:[#allocation2 + $0x10] sm:$0xff] %v505_v2 }
  0x1b   : > { %514 = vsyncadd [#allocation8], 384  ;;  %s3111_s29 = sld [smem:[#allocation20_spill]] }
  0x21   : > { %v548_v3 = vld [vmem:[%s3111_s29] sm:$0xff]  ;;  %v550_v4 = vld [vmem:[%s3111_s29 + $0x8] sm:$0xff] }
  0x22   : > { %549 = vst [vmem:[#allocation4] sm:$0xff] %v548_v3  ;;  %551 = vst [vmem:[#allocation4 + $0x8] sm:$0xff] %v550_v4 }
  0x23   : > { %559 = vsyncadd [#allocation8 + $0x1], 256  ;;  %s3112_s24 = sld [smem:[#allocation21_spill]] }
  0x29   : > { %v593_v5 = vld [vmem:[%s3112_s24] sm:$0xff]  ;;  %v595_v6 = vld [vmem:[%s3112_s24 + $0x8] sm:$0xff] }
  0x2a   : > { %594 = vst [vmem:[#allocation5] sm:$0xff] %v593_v5  ;;  %596 = vst [vmem:[#allocation5 + $0x8] sm:$0xff] %v595_v6 }
  0x2b   : > { %604 = vsyncadd [#allocation8 + $0x2], 256  ;;  %s3113_s28 = sld [smem:[#allocation22_spill]] }
  0x31   : > { %v638_v7 = vld [vmem:[%s3113_s28] sm:$0xff] }
  0x32   : > { %639 = vst [vmem:[#allocation6] sm:$0xff] %v638_v7 }
  0x33   : > { %647 = vsyncadd [#allocation8 + $0x3], 128  ;;  %s3114_s0 = sld [smem:[#allocation23_spill]] }
  0x39   : > { %v681_v8 = vld [vmem:[%s3114_s0] sm:$0xff] }
  0x3a   : > { %682 = vst [vmem:[#allocation7] sm:$0xff] %v681_v8 }
  0x3b   : > { %690 = vsyncadd [#allocation8 + $0x4], 128 }
  0x3c   : > { %2502 = dma.done.wait [#allocation8], 384 }
  0x3d   : > { %2503 = vsyncadd [#allocation8], 4294966912 }
  0x3e   : > { %2504 = dma.done.wait [#allocation8 + $0x1], 256 }
  0x3f   : > { %2505 = vsyncadd [#allocation8 + $0x1], 4294967040 }
  0x40   : > { %2506 = dma.done.wait [#allocation8 + $0x2], 256 }
  0x41   : > { %2507 = vsyncadd [#allocation8 + $0x2], 4294967040 }
  0x42   : > { %2508 = dma.done.wait [#allocation8 + $0x3], 128 }
  0x43   : > { %2509 = vsyncadd [#allocation8 + $0x3], 4294967168 }
  0x44   : > { %2510 = dma.done.wait [#allocation8 + $0x4], 128 }
  0x45   : > { %2511 = vsyncadd [#allocation8 + $0x4], 4294967168 }
  0x46 PF: > { %v707_v9 = vld [vmem:[%s3086_s8] sm:$0xff]  ;;  %v708_v10 = vld [vmem:[%s3086_s8 + $0x8] sm:$0xff]  ;;  %v816_v11 = vlaneseq  ;;  %v3102_v12 = vmov 0.0|0.0   ;;  %vm2517_vm0 = vmmov 0   ;;  %v3103_v14 = vmov 0.0   ;;  %v812_v17 = vld [vmem:[#allocation4] sm:$0xff] }
  0x47   : > { %2454 = vmatprep.subr.bf16.mxu0 %v3102_v12  ;;  %v2455_v13 = vpack.c.bf16 %v708_v10, %v707_v9  ;;  %2386 = vmatprep.mubr.msk.f32.mxu0 %vm2517_vm0, %v3103_v14  ;;  %vm716_vm1 = vcmask 130048   ;;  %v2716_v29 = vld [vmem:[#allocation2 + $0x10] sm:$0xff]  ;;  %v813_v36 = vld [vmem:[#allocation4 + $0x8] sm:$0xff]  ;;  %v1156_v45 = vld [vmem:[#allocation5] sm:$0xff]  ;;  %p2336_p4 = scmp.ne.s32.totalorder %s2635_s22, 1 }
  0x48   : > { %v2676_v15 = vshrl.u32 %v816_v11, 7  ;;  %2457 = vmatprep.subr.bf16.mxu1 %v3102_v12  ;;  %2399 = vmatprep.mubr.msk.f32.mxu1 %vm2517_vm0, %v3103_v14  ;;  %v1157_v54 = vld [vmem:[#allocation5 + $0x8] sm:$0xff]  ;;  %v1504_v63 = vld [vmem:[%s3089_s11] sm:$0xff] }
  0x49   : > { %2456 = vmatpush3.bf16.msra.mxu0 %v2455_v13  ;;  %v1505_v0 = vld [vmem:[%s3089_s11 + $0x8] sm:$0xff]  ;;  %v1658_v2 = vld [vmem:[%s3091_s13] sm:$0xff] }
  0x4a   : > { %v2684_v18 = vsub.s32 0, %v2676_v15  ;;  %v2687_v19 = vsub.s32 2, %v2676_v15  ;;  %v2690_v20 = vsub.s32 1, %v2676_v15  ;;  %v2693_v21 = vsub.s32 3, %v2676_v15  ;;  %2466 = vmatprep.subr.bf16.mxu0 %v3102_v12  ;;  %v1659_v3 = vld [vmem:[%s3091_s13 + $0x8] sm:$0xff] }
  0x4b   : > { %v2707_v27 = vsub.s32 4, %v2676_v15  ;;  %v2710_v28 = vsub.s32 5, %v2676_v15  ;;  %v860_v32 = vsub.s32 6, %v2676_v15  ;;  %v867_v33 = vsub.s32 7, %v2676_v15 }
  0x4c   : > { %v819_v22 = vrot.slane %v812_v17, %v2684_v18  ;;  %v833_v23 = vrot.slane %v812_v17, %v2687_v19  ;;  %v826_v25 = vrot.slane %v812_v17, %v2690_v20  ;;  %v840_v26 = vrot.slane %v812_v17, %v2693_v21 }
  0x4d   : > { %v2681_v16 = vld [vmem:[#allocation2] sm:$0xff]  ;;  %v2702_v24 = vld [vmem:[#allocation2 + $0x8] sm:$0xff]  ;;  %v847_v30 = vrot.slane %v812_v17, %v2707_v27  ;;  %v854_v31 = vrot.slane %v812_v17, %v2710_v28  ;;  %v861_v34 = vrot.slane %v812_v17, %v860_v32  ;;  %v868_v35 = vrot.slane %v812_v17, %v867_v33 }
  0x4e   : > { %2387 = vmatmul.mubr.msk.f32.vlgmr.msra.gmra.mrb[0].mxu0 %vm716_vm1, %v2681_v16  ;;  %821 = vbcast.lane.b32.xlu0 %v819_v22, 256  ;;  %v875_v37 = vrot.slane %v813_v36, %v2684_v18  ;;  %v882_v38 = vrot.slane %v813_v36, %v2690_v20  ;;  %v889_v39 = vrot.slane %v813_v36, %v2687_v19 }
  0x4f   : > { %2389 = vmatprep.mubr.msk.f32.mxu0 %vm2517_vm0, %v3103_v14  ;;  %835 = vbcast.lane.b32.xlu1 %v833_v23, 256  ;;  %v896_v40 = vrot.slane %v813_v36, %v2693_v21  ;;  %v903_v41 = vrot.slane %v813_v36, %v2707_v27  ;;  %v910_v42 = vrot.slane %v813_v36, %v2710_v28 }
  0x50   : > { %v917_v43 = vrot.slane %v813_v36, %v860_v32  ;;  %v924_v44 = vrot.slane %v813_v36, %v867_v33  ;;  %v1165_v46 = vrot.slane %v1156_v45, %v2684_v18  ;;  %v1172_v47 = vrot.slane %v1156_v45, %v2690_v20 }
  0x51   : > { %v1179_v48 = vrot.slane %v1156_v45, %v2687_v19  ;;  %v1186_v49 = vrot.slane %v1156_v45, %v2693_v21  ;;  %v1193_v50 = vrot.slane %v1156_v45, %v2707_v27  ;;  %v1200_v51 = vrot.slane %v1156_v45, %v2710_v28 }
  0x52   : > { %2390 = vmatmul.mubr.msk.f32.gmra.mrb[2].mxu0 %vm716_vm1, %v2702_v24  ;;  %828 = vbcast.lane.b32.xlu0 %v826_v25, 256  ;;  %v1207_v52 = vrot.slane %v1156_v45, %v860_v32  ;;  %v1214_v53 = vrot.slane %v1156_v45, %v867_v33  ;;  %v1221_v55 = vrot.slane %v1157_v54, %v2684_v18 }
  0x53   : > { %2392 = vmatprep.mubr.msk.f32.mxu0 %vm2517_vm0, %v3103_v14  ;;  %842 = vbcast.lane.b32.xlu1 %v840_v26, 256  ;;  %v1228_v56 = vrot.slane %v1157_v54, %v2690_v20  ;;  %v1235_v57 = vrot.slane %v1157_v54, %v2687_v19  ;;  %v1242_v58 = vrot.slane %v1157_v54, %v2693_v21  ;;  %v2326_v26 = vld [vmem:[%s3087_s9] ss:$0 sm:$0xff] }
  0x54   : > { %v1249_v59 = vrot.slane %v1157_v54, %v2707_v27  ;;  %v1256_v60 = vrot.slane %v1157_v54, %v2710_v28  ;;  %v1263_v61 = vrot.slane %v1157_v54, %v860_v32  ;;  %v1270_v62 = vrot.slane %v1157_v54, %v867_v33 }
  0x55   : > { %v2458_v1 = vpack.c.bf16 %v1505_v0, %v1504_v63  ;;  %v2467_v4 = vpack.c.bf16 %v1659_v3, %v1658_v2 }
  0x56   : > { %2393 = vmatmul.mubr.msk.f32.gmra.mrb[4].mxu0 %vm716_vm1, %v2716_v29  ;;  %849 = vbcast.lane.b32.xlu0 %v847_v30, 256 }
  0x57   : > { %2420 = vmatprep.mubr.msk.f32.mxu0 %vm2517_vm0, %v3103_v14  ;;  %856 = vbcast.lane.b32.xlu1 %v854_v31, 256 }
  0x58   : > { %2459 = vmatpush3.bf16.msra.mxu1 %v2458_v1  ;;  %2468 = vmatpush3.bf16.msra.mxu0 %v2467_v4 }
  0x59   : > { %2460 = vmatprep.subr.bf16.mxu1 %v3102_v12 }
  0x5a   : > { %863 = vbcast.lane.b32.xlu0 %v861_v34, 256 }
  0x5b   : > { %870 = vbcast.lane.b32.xlu1 %v868_v35, 256  ;;  %2421 = vmatmul.mubr.msk.f32.vlgmr.msra.gmra.mrb[6].mxu0 %vm716_vm1, %v2716_v29 }
  0x5e   : > { %877 = vbcast.lane.b32.xlu0 %v875_v37, 256  ;;  %v2519_v37 = vmov 1966171168  }
  0x5f   : > { %884 = vbcast.lane.b32.xlu1 %v882_v38, 256  ;;  %v932_v38 = vunpack.c.l.s4 %v2519_v37 }
  0x62   : > { %891 = vbcast.lane.b32.xlu0 %v889_v39, 256 }
  0x63   : > { %898 = vbcast.lane.b32.xlu1 %v896_v40, 256 }
  0x66   : > { %905 = vbcast.lane.b32.xlu0 %v903_v41, 256 }
  0x67   : > { %912 = vbcast.lane.b32.xlu1 %v910_v42, 256  ;;  %v933_v42 = vunpack.c.0.s8 %v932_v38 }
  0x6a   : > { %919 = vbcast.lane.b32.xlu0 %v917_v43, 256 }
  0x6b   : > { %926 = vbcast.lane.b32.xlu1 %v924_v44, 256 }
  0x6e   : > { %1167 = vbcast.lane.b32.xlu0 %v1165_v46, 256 }
  0x6f   : > { %1174 = vbcast.lane.b32.xlu1 %v1172_v47, 256 }
  0x72   : > { %1181 = vbcast.lane.b32.xlu0 %v1179_v48, 256 }
  0x73   : > { %1188 = vbcast.lane.b32.xlu1 %v1186_v49, 256  ;;  %v2803_v49 = vsub.s32 %v933_v42, %v2676_v15 }
  0x76   : > { %1195 = vbcast.lane.b32.xlu0 %v1193_v50, 256 }
  0x77   : > { %1202 = vbcast.lane.b32.xlu1 %v1200_v51, 256 }
  0x7a   : > { %1209 = vbcast.lane.b32.xlu0 %v1207_v52, 256 }
  0x7b   : > { %1216 = vbcast.lane.b32.xlu1 %v1214_v53, 256 }
  0x7e   : > { %1223 = vbcast.lane.b32.xlu0 %v1221_v55, 256 }
  0x7f   : > { %1230 = vbcast.lane.b32.xlu1 %v1228_v56, 256 }
  0x82   : > { %1237 = vbcast.lane.b32.xlu0 %v1235_v57, 256 }
  0x83   : > { %1244 = vbcast.lane.b32.xlu1 %v1242_v58, 256 }
  0x86   : > { %1251 = vbcast.lane.b32.xlu0 %v1249_v59, 256 }
  0x87   : > { %1258 = vbcast.lane.b32.xlu1 %v1256_v60, 256 }
  0x8a   : > { %1265 = vbcast.lane.b32.xlu0 %v1263_v61, 256 }
  0x8b   : > { %1272 = vbcast.lane.b32.xlu1 %v1270_v62, 256 }
  0xc0   : > { %v2763_v7 = vpop.permute.xlu0 %821 }
  0xc1   : > { %v2759_v5 = vpop.permute.xlu1 %835 }
  0xc4   : > { %v2767_v9 = vpop.permute.xlu0 %828 }
  0xc5   : > { %v2761_v6 = vpop.permute.xlu1 %842 }
  0xc8   : > { %v2771_v11 = vpop.permute.xlu0 %849 }
  0xc9   : > { %v2765_v8 = vpop.permute.xlu1 %856 }
  0xcc   : > { %v2775_v17 = vpop.permute.xlu0 %863 }
  0xcd   : > { %v2769_v10 = vpop.permute.xlu1 %870 }
  0xd0   : > { %v2779_v20 = vpop.permute.xlu0 %877 }
  0xd1   : > { %v2773_v13 = vpop.permute.xlu1 %884 }
  0xd4   : > { %v2783_v22 = vpop.permute.xlu0 %891 }
  0xd5   : > { %v2777_v19 = vpop.permute.xlu1 %898 }
  0xd8   : > { %v2787_v25 = vpop.permute.xlu0 %905 }
  0xd9   : > { %v2781_v21 = vpop.permute.xlu1 %912 }
  0xdc   : > { %v2794_v28 = vpop.permute.xlu0 %919 }
  0xdd   : > { %v2785_v23 = vpop.permute.xlu1 %926 }
  0xe0   : > { %v2799_v39 = vpop.permute.xlu0 %1167 }
  0xe1   : > { %v2792_v27 = vpop.permute.xlu1 %1174 }
  0xe4   : > { %v1182_v47 = vpop.permute.xlu0 %1181 }
  0xe5   : > { %v2796_v34 = vpop.permute.xlu1 %1188 }
  0xe8   : > { %v1196_v56 = vpop.permute.xlu0 %1195 }
  0xe9   : > { %v1203_v45 = vpop.permute.xlu1 %1202 }
  0xed   : > { %v1217_v52 = vpop.permute.xlu1 %1216 }
  0xf1   : > { %v2817_v3 = vpop.permute.xlu1 %1230 }
 0x121   : > { %v792_v29 = vpop.f32.mrb[0].mxu0 }
 0x122   : > { %v793_v30 = vadd.f32 %v2326_v26, %v792_v29  ;;  %v2388_v31 = vpop.f32.mrb[1].mxu0 }
 0x123   : > { %v1210_v31 = vpop.permute.xlu0 %1209 }
 0x124   : > { %v806_v32 = vmax.f32 %v793_v30, 0.0 }
 0x125   : > { %v797_v33 = vpop.f32.mrb[2].mxu0 }
 0x126   : > { %809 = vst.msk [vmem:[#allocation3] sm:$0xff] %vm716_vm1, %v806_v32  ;;  %v798_v35 = vadd.f32 %v2326_v26, %v797_v33  ;;  %v2391_v36 = vpop.f32.mrb[3].mxu0 }
 0x128   : > { %v807_v40 = vmax.f32 %v798_v35, 0.0 }
 0x129   : > { %v802_v41 = vpop.f32.mrb[4].mxu0 }
 0x12a   : > { %810 = vst.msk [vmem:[#allocation3 + $0x8] sm:$0xff] %vm716_vm1, %v807_v40  ;;  %v803_v43 = vadd.f32 %v2326_v26, %v802_v41  ;;  %v2394_v44 = vpop.f32.mrb[5].mxu0 }
 0x12c   : > { %v808_v46 = vmax.f32 %v803_v43, 0.0 }
 0x12d   : > { %v814_v48 = vld [vmem:[#allocation3] sm:$0xff] }
 0x12e   : > { %811 = vst.msk [vmem:[#allocation3 + $0x10] sm:$0xff] %vm716_vm1, %v808_v46  ;;  %v930_v50 = vcombine.high %v814_v48, %v814_v48  ;;  %v937_v55 = vrot.slane %v814_v48, %v2803_v49 }
 0x130   : > { %v944_v60 = vrot.slane %v930_v50, %v2803_v49  ;;  %v945_v63 = vcombine.high %v937_v55, %v937_v55  ;;  %v2814_v0 = vrot.slane %v937_v55, %v2803_v49 }
 0x131   : > { %v1160_v51 = vld [vmem:[#allocation3 + $0x8] sm:$0xff] }
 0x132   : > { %v1283_v53 = vrot.slane %v1160_v51, %v2803_v49  ;;  %v1276_v54 = vcombine.high %v1160_v51, %v1160_v51  ;;  %v946_v26 = vcombine.high %v944_v60, %v944_v60  ;;  %v2821_v33 = vrot.slane %v944_v60, %v2803_v49 }
 0x133   : > { %v2827_v36 = vrot.slane %v945_v63, %v2803_v49  ;;  %v975_v37 = vcombine.high %v2814_v0, %v2814_v0  ;;  %v1031_v42 = vrot.slane %v2814_v0, %v2684_v18 }
 0x134   : > { %v1299_v57 = vrot.slane %v1283_v53, %v2803_v49  ;;  %v1291_v58 = vcombine.high %v1283_v53, %v1283_v53  ;;  %v1290_v59 = vrot.slane %v1276_v54, %v2803_v49  ;;  %v2844_v48 = vrot.slane %v946_v26, %v2803_v49  ;;  %v1245_v54 = vpop.permute.xlu1 %1244 }
 0x135   : > { %v1161_v15 = vld [vmem:[#allocation3 + $0x10] sm:$0xff]  ;;  %v976_v55 = vcombine.high %v2821_v33, %v2821_v33  ;;  %v977_v60 = vcombine.high %v2827_v36, %v2827_v36  ;;  %v1035_v63 = vrot.slane %v2827_v36, %v2684_v18 }
 0x136   : > { %v1313_v61 = vrot.slane %v1291_v58, %v2803_v49  ;;  %v1306_v62 = vrot.slane %v1290_v59, %v2803_v49  ;;  %v1292_v1 = vcombine.high %v1290_v59, %v1290_v59  ;;  %v1332_v2 = vrot.slane %v1161_v15, %v2803_v49 }
 0x137   : > { %v1321_v4 = vcombine.high %v1299_v57, %v1299_v57  ;;  %v1325_v41 = vcombine.high %v1161_v15, %v1161_v15  ;;  %v2838_v44 = vrot.slane %v1299_v57, %v2684_v18  ;;  %v1224_v15 = vpop.permute.xlu0 %1223 }
 0x138   : > { %v1323_v29 = vcombine.high %v1313_v61, %v1313_v61  ;;  %v1320_v30 = vrot.slane %v1292_v1, %v2803_v49  ;;  %v1322_v32 = vcombine.high %v1306_v62, %v1306_v62  ;;  %v2824_v35 = vrot.slane %v1306_v62, %v2684_v18 }
 0x139   : > { %v1348_v40 = vrot.slane %v1332_v2, %v2803_v49  ;;  %v2835_v43 = vrot.slane %v1321_v4, %v2684_v18  ;;  %v2841_v46 = vrot.slane %v1313_v61, %v2684_v18  ;;  %v1340_v59 = vcombine.high %v1332_v2, %v1332_v2 }
 0x13a   : > { %v1324_v38 = vcombine.high %v1320_v30, %v1320_v30  ;;  %v2847_v50 = vrot.slane %v1323_v29, %v2684_v18  ;;  %v2850_v51 = vrot.slane %v1320_v30, %v2684_v18  ;;  %v2853_v53 = vrot.slane %v1322_v32, %v2684_v18 }
 0x13b   : > { %v1458_v57 = vmul.f32 %v2824_v35, %v1196_v56  ;;  %v1370_v61 = vcombine.high %v1348_v40, %v1348_v40  ;;  %v1339_v62 = vrot.slane %v1325_v41, %v2803_v49  ;;  %v1039_v1 = vrot.slane %v975_v37, %v2684_v18  ;;  %v1238_v12 = vpop.permute.xlu0 %1237 }
 0x13c   : > { %v2859_v58 = vrot.slane %v1324_v38, %v2684_v18  ;;  %v1456_v4 = vmul.f32 %v2835_v43, %v1182_v47  ;;  %v1454_v56 = vmul.f32 %v2838_v44, %v2799_v39  ;;  %v1455_v2 = vmul.f32 %v2841_v46, %v2792_v27 }
 0x13d   : > { %v1409_v26 = vrot.slane %v1348_v40, %v2684_v18  ;;  %v1457_v29 = vmul.f32 %v2847_v50, %v2796_v34  ;;  %v1459_v30 = vmul.f32 %v2850_v51, %v1203_v45  ;;  %v1460_v32 = vmul.f32 %v2853_v53, %v1210_v31  ;;  %v1259_v34 = vpop.permute.xlu1 %1258 }
 0x13e   : > { %v1362_v36 = vrot.slane %v1340_v59, %v2803_v49  ;;  %v2879_v37 = vsel %vm716_vm1, %v1458_v57, -inf  ;;  %v1461_v47 = vmul.f32 %v2859_v58, %v1217_v52  ;;  %v1417_v39 = vrot.slane %v1370_v61, %v2684_v18 }
 0x13f   : > { %v1341_v38 = vcombine.high %v1339_v62, %v1339_v62  ;;  %v2885_v41 = vrot.slane %v1339_v62, %v2803_v49  ;;  %v978_v45 = vcombine.high %v2844_v48, %v2844_v48  ;;  %v2890_v31 = vsel %vm716_vm1, %v1456_v4, -inf }
 0x140   : > { %v1413_v27 = vrot.slane %v1362_v36, %v2684_v18  ;;  %v1372_v40 = vcombine.high %v1362_v36, %v1362_v36  ;;  %v2893_v57 = vsel %vm716_vm1, %v1454_v56, -inf  ;;  %v1462_v52 = vmul.f32 %v1409_v26, %v1224_v15 }
 0x141   : > { %v1369_v59 = vrot.slane %v1341_v38, %v2803_v49  ;;  %v2899_v36 = vsel %vm716_vm1, %v1459_v30, -inf  ;;  %v2902_v62 = vsel %vm716_vm1, %v1460_v32, -inf  ;;  %v2906_v4 = vsel %vm716_vm1, %v1457_v29, -inf  ;;  %v1273_v61 = vpop.permute.xlu1 %1272 }
 0x142   : > { %v1421_v14 = vrot.slane %v1372_v40, %v2684_v18  ;;  %v2909_v56 = vsel %vm716_vm1, %v1455_v2, -inf  ;;  %v2912_v49 = vsel %vm716_vm1, %v1461_v47, -inf  ;;  %v1464_v15 = vmul.f32 %v1417_v39, %v1238_v12 }
 0x143   : > { %v1463_v26 = vmul.f32 %v1413_v27, %v2817_v3  ;;  %v1429_v30 = vrot.slane %v1369_v59, %v2684_v18  ;;  %v1371_v32 = vcombine.high %v2885_v41, %v2885_v41  ;;  %v1373_v38 = vcombine.high %v1369_v59, %v1369_v59 }
 0x144   : > { %v1479_v29 = vmax.f32 %v2890_v31, %v2902_v62  ;;  %v2923_v2 = vsel %vm716_vm1, %v1462_v52, -inf  ;;  %v1465_v47 = vmul.f32 %v1421_v14, %v1245_v54  ;;  %v1047_v3 = vrot.slane %v2821_v33, %v2684_v18  ;;  %v1252_v33 = vpop.permute.xlu0 %1251 }
 0x145   : > { %v1437_v12 = vrot.slane %v1373_v38, %v2684_v18  ;;  %v1051_v39 = vrot.slane %v2844_v48, %v2684_v18  ;;  %v1055_v27 = vrot.slane %v976_v55, %v2684_v18  ;;  %v1481_v59 = vmax.f32 %v2906_v4, %v2912_v49 }
 0x146   : > { %v1425_v31 = vrot.slane %v2885_v41, %v2684_v18  ;;  %v1043_v52 = vrot.slane %v977_v60, %v2684_v18  ;;  %v1059_v14 = vrot.slane %v978_v45, %v2684_v18  ;;  %v1484_v54 = vsel %vm716_vm1, %v1463_v26, -inf }
 0x147   : > { %v1486_v62 = vsel %vm716_vm1, %v1464_v15, -inf  ;;  %v1467_v38 = vmul.f32 %v1429_v30, %v1259_v34  ;;  %v1433_v48 = vrot.slane %v1371_v32, %v2684_v18  ;;  %v1488_v55 = vsel %vm716_vm1, %v1465_v47, -inf }
 0x148   : > { %v1469_v40 = vmul.f32 %v1437_v12, %v1273_v61  ;;  %v1108_v41 = vmul.f32 %v1031_v42, %v2763_v7  ;;  %v1109_v60 = vmul.f32 %v1035_v63, %v2767_v9  ;;  %v1110_v45 = vmul.f32 %v1039_v1, %v2759_v5 }
 0x149   : > { %v1112_v4 = vmul.f32 %v1047_v3, %v2771_v11  ;;  %v1113_v49 = vmul.f32 %v1051_v39, %v2765_v8  ;;  %v1114_v34 = vmul.f32 %v1055_v27, %v2775_v17  ;;  %v1111_v15 = vmul.f32 %v1043_v52, %v2761_v6  ;;  %v1266_v17 = vpop.permute.xlu0 %1265 }
 0x14a   : > { %v1115_v26 = vmul.f32 %v1059_v14, %v2769_v10  ;;  %v1116_v61 = vmul.f32 %v2838_v44, %v2779_v20  ;;  %v1117_v18 = vmul.f32 %v2841_v46, %v2773_v13  ;;  %v1118_v7 = vmul.f32 %v2835_v43, %v2783_v22 }
 0x14b   : > { %v1119_v5 = vmul.f32 %v2847_v50, %v2777_v19  ;;  %v1120_v8 = vmul.f32 %v2824_v35, %v2787_v25  ;;  %v1121_v6 = vmul.f32 %v2850_v51, %v2781_v21  ;;  %v1122_v9 = vmul.f32 %v2853_v53, %v2794_v28 }
 0x14c   : > { %v1123_v10 = vmul.f32 %v2859_v58, %v2785_v23  ;;  %v1124_v11 = vsel %vm716_vm1, %v1108_v41, -inf  ;;  %v1125_v13 = vsel %vm716_vm1, %v1109_v60, -inf  ;;  %v1126_v20 = vsel %vm716_vm1, %v1110_v45, -inf }
 0x14d   : > { %v1128_v19 = vsel %vm716_vm1, %v1112_v4, -inf  ;;  %v1130_v22 = vsel %vm716_vm1, %v1113_v49, -inf  ;;  %v1132_v25 = vsel %vm716_vm1, %v1114_v34, -inf  ;;  %v1127_v21 = vsel %vm716_vm1, %v1111_v15, -inf }
 0x14e   : > { %v1129_v0 = vmax.f32 %v1124_v11, %v1128_v19  ;;  %v1131_v28 = vmax.f32 %v1125_v13, %v1130_v22  ;;  %v1133_v35 = vmax.f32 %v1126_v20, %v1132_v25  ;;  %v1134_v23 = vsel %vm716_vm1, %v1115_v26, -inf  ;;  %v2332_v19 = vld [vmem:[%s3090_s12] ss:$0 sm:$0xff] }
 0x14f   : > { %v1136_v42 = vsel %vm716_vm1, %v1116_v61, -inf  ;;  %v1138_v43 = vsel %vm716_vm1, %v1117_v18, -inf  ;;  %v1140_v44 = vsel %vm716_vm1, %v1118_v7, -inf  ;;  %v1468_v46 = vmul.f32 %v1433_v48, %v1266_v17  ;;  %v1661_v61 = vld [vmem:[%s3092_s14 + $0x8] sm:$0xff] }
 0x150   : > { %v1135_v50 = vmax.f32 %v1127_v21, %v1134_v23  ;;  %v1137_v51 = vmax.f32 %v1129_v0, %v1136_v42  ;;  %v1139_v53 = vmax.f32 %v1131_v28, %v1138_v43  ;;  %v1141_v58 = vmax.f32 %v1133_v35, %v1140_v44  ;;  %v2335_v0 = vld [vmem:[%s3093_s15] ss:$0 sm:$0xff] }
 0x151   : > { %v1142_v63 = vsel %vm716_vm1, %v1119_v5, -inf  ;;  %v1144_v1 = vsel %vm716_vm1, %v1120_v8, -inf  ;;  %v1146_v30 = vsel %vm716_vm1, %v1121_v6, -inf  ;;  %v1489_v32 = vmax.f32 %v1481_v59, %v1488_v55 }
 0x152   : > { %v1143_v47 = vmax.f32 %v1135_v50, %v1142_v63  ;;  %v1147_v12 = vmax.f32 %v1139_v53, %v1146_v30  ;;  %v1148_v3 = vsel %vm716_vm1, %v1122_v9, -inf  ;;  %v1487_v39 = vmax.f32 %v1479_v29, %v1486_v62 }
 0x153   : > { %v1466_v27 = vmul.f32 %v1425_v31, %v1252_v33  ;;  %v1496_v52 = vsel %vm716_vm1, %v1469_v40, -inf  ;;  %v1150_v14 = vsel %vm716_vm1, %v1123_v10, -inf  ;;  %v3115_v48 = vmax.f32 %v2909_v56, %v2899_v36  ;;  %v1502_v36 = vld [vmem:[%s3088_s10] sm:$0xff]  ;;  %v1503_v56 = vld [vmem:[%s3088_s10 + $0x8] sm:$0xff]  ;;  %v1801_v10 = vpop.f32.mrb[6].mxu0 }
 0x154   : > { %v1145_v60 = vmax.f32 %v1137_v51, %v1144_v1  ;;  %v1149_v45 = vmax.f32 %v1141_v58, %v1148_v3  ;;  %v1151_v4 = vmax.f32 %v1143_v47, %v1150_v14  ;;  %v1492_v49 = vsel %vm716_vm1, %v1467_v38, -inf  ;;  %v2422_v11 = vpop.f32.mrb[7].mxu0 }
 0x155   : > { %v1485_v41 = vmax.f32 %v3115_v48, %v1484_v54  ;;  %v1494_v59 = vsel %vm716_vm1, %v1468_v46, -inf  ;;  %v3116_v29 = vmax.f32 %v2893_v57, %v2879_v37  ;;  %v1497_v62 = vmax.f32 %v1489_v32, %v1496_v52 }
 0x156   : > { %v1152_v40 = vmax.f32 %v1145_v60, %v1147_v12  ;;  %v1153_v33 = vmax.f32 %v1149_v45, %v1151_v4  ;;  %v1490_v54 = vsel %vm716_vm1, %v1466_v27, -inf  ;;  %v1495_v55 = vmax.f32 %v1487_v39, %v1494_v59 }
 0x157   : > { %v1483_v31 = vmax.f32 %v3116_v29, %v2923_v2  ;;  %v1493_v38 = vmax.f32 %v1485_v41, %v1492_v49  ;;  %v2461_v15 = vpack.c.bf16 %v1503_v56, %v1502_v36  ;;  %v1660_v2 = vld [vmem:[%s3092_s14] sm:$0xff]  ;;  %v3117_v7 = vmov 0.0  }
 0x158   : > { %v1154_v34 = vmax.f32 %v1152_v40, %v1153_v33  ;;  %v1499_v37 = vmax.f32 %v1495_v55, %v1497_v62  ;;  %v2464_v5 = vpack.c.bf16 %v1661_v61, %v1660_v2  ;;  %v3118_v6 = vmov 0.0|0.0  }
 0x159   : > { %v1491_v26 = vmax.f32 %v1483_v31, %v1490_v54 }
 0x15a   : > { %v1155_v57 = vmax.f32 %v1154_v34, 0.0 }
 0x15b   : > { %v1498_v18 = vmax.f32 %v1491_v26, %v1493_v38 }
 0x15c   : > { %2400 = vmatmul.mubr.msk.f32.vlgmr.msra.gmra.mrb[0].mxu1 %vm716_vm1, %v1155_v57 }
 0x15d   : > { %2462 = vmatpush3.bf16.msra.mxu1 %v2461_v15  ;;  %2406 = vmatprep.mubr.msk.f32.mxu1 %vm2517_vm0, %v3117_v7  ;;  %v1500_v8 = vmax.f32 %v1498_v18, %v1499_v37 }
 0x15e   : > { %2463 = vmatprep.subr.bf16.mxu1 %v3118_v6 }
 0x15f   : > { %v1501_v9 = vmax.f32 %v1500_v8, 0.0 }
 0x160   : > { %2407 = vmatmul.mubr.msk.f32.vlgmr.msra.gmra.mrb[2].mxu1 %vm716_vm1, %v2681_v16 }
 0x161   : > { %2465 = vmatpush3.bf16.msra.mxu1 %v2464_v5  ;;  %2413 = vmatprep.mubr.msk.f32.mxu1 %vm2517_vm0, %v3117_v7 }
 0x164   : > { %2414 = vmatmul.mubr.msk.f32.vlgmr.msra.gmra.mrb[4].mxu1 %vm716_vm1, %v1501_v9 }
 0x22f   : > { %v1575_v13 = vpop.f32.mrb[0].mxu1 }
 0x230   : > { %v2401_v17 = vpop.f32.mrb[1].mxu1 }
 0x233   : > { %v1645_v20 = vpop.f32.mrb[2].mxu1 }
 0x234   : > { %v1646_v22 = vadd.f32 %v1645_v20, %v1575_v13  ;;  %v2408_v25 = vpop.f32.mrb[3].mxu1 }
 0x236   : > { %v1656_v21 = vadd.f32 %v2332_v19, %v1646_v22 }
 0x237   : > { %v1731_v16 = vpop.f32.mrb[4].mxu1 }
 0x238   : > { %v1657_v28 = vmax.f32 %v1656_v21, 0.0  ;;  %v1802_v35 = vadd.f32 %v1801_v10, %v1731_v16  ;;  %v2415_v23 = vpop.f32.mrb[5].mxu1  ;;  %1819 = sbr.rel (%p2336_p4) target bundleno = 575 (0x23f), region = 258 }
 0x23a   : > { %1814 = vst.msk [vmem:[#allocation2] sm:$0xff] %vm716_vm1, %v1657_v28  ;;  %v1812_v42 = vadd.f32 %v2335_v0, %v1802_v35  ;;  %1820 = vst.msk [vmem:[%s3098_s20] sm:$0xff] (!%p2336_p4), %vm716_vm1, %v1657_v28 }
 0x23c   : > { %v1813_v43 = vmax.f32 %v1812_v42, 0.0 }
 0x23e   : > { %1815 = vst.msk [vmem:[#allocation2 + $0x10] sm:$0xff] %vm716_vm1, %v1813_v43  ;;  %2337 = vst.msk [vmem:[%s3098_s20 + $0x8] sm:$0xff] (!%p2336_p4), %vm716_vm1, %v1813_v43 }
 0x23f PF: > { %p2338_p5 = scmp.ge.s32.totalorder %s2635_s22, 1 }
 0x240   : > { %v2520_v44 = vmov (!%p2338_p5), 0.0   ;;  %v1827_v46 = vld [vmem:[#allocation6] sm:$0xff] (!%p2338_p5)  ;;  %vm1828_vm2 = vcmask (!%p2338_p5), 64512   ;;  %v1909_v50 = vld [vmem:[#allocation7] sm:$0xff] (!%p2338_p5)  ;;  %vm2521_vm3 = vmmov (!%p2338_p5), 0   ;;  %v1902_v51 = vld [vmem:[%s3083_s5] sm:$0xff] (!%p2338_p5) }
 0x241   : > { %1826 = sbr.rel (%p2338_p5) target bundleno = 1018 (0x3fa), region = 262  ;;  %2423 = vmatprep.subr.mxu0 (!%p2338_p5), %v2520_v44  ;;  %2428 = vmatprep.subr.mxu1 (!%p2338_p5), %v2520_v44  ;;  %v2522_v53 = vmov (!%p2338_p5), 0   ;;  %v1992_v58 = vld [vmem:[%s3095_s17] sm:$0xff] (!%p2338_p5)  ;;  %v1993_v63 = vld [vmem:[%s3095_s17 + $0x8] sm:$0xff] (!%p2338_p5)  ;;  %v2523_v1 = vmov (!%p2338_p5), 0.0|0.0  }
 0x242   : > { %2424 = vmatpush3.msra.mxu0 (!%p2338_p5), %v1657_v28  ;;  %2425 = vmatprep.mubr.msk.f32.mxu0 (!%p2338_p5), %vm2521_vm3, %v2520_v44  ;;  %v2470_v30 = vpack.c.bf16 (!%p2338_p5), %v1993_v63, %v1992_v58  ;;  %v1983_v32 = vld [vmem:[%s3084_s6] sm:$0xff] (!%p2338_p5)  ;;  %v1991_v12 = vld [vmem:[%s3094_s16 + $0x8] sm:$0xff] (!%p2338_p5) }
 0x243   : > { %2429 = vmatpush3.msra.mxu1 (!%p2338_p5), %v1813_v43  ;;  %2430 = vmatprep.mubr.msk.f32.mxu1 (!%p2338_p5), %vm2521_vm3, %v2520_v44  ;;  %v1990_v47 = vld [vmem:[%s3094_s16] sm:$0xff] (!%p2338_p5)  ;;  %v2138_v48 = vld [vmem:[%s3096_s18 + $0x8] sm:$0xff] (!%p2338_p5) }
 0x244   : > { %2426 = vmatmul.mubr.msk.f32.vlgmr.msra.gmra.mrb[0].mxu0 (!%p2338_p5), %vm1828_vm2, %v1827_v46  ;;  %2431 = vmatmul.mubr.msk.f32.vlgmr.msra.gmra.mrb[0].mxu1 (!%p2338_p5), %vm1828_vm2, %v1909_v50  ;;  %v2473_v3 = vpack.c.bf16 (!%p2338_p5), %v1991_v12, %v1990_v47  ;;  %v2222_v39 = vld [vmem:[%s3085_s7] sm:$0xff] (!%p2338_p5) }
 0x245   : > { %2496 = vset.pattern.permute.xlu0 (!%p2338_p5), %v2522_v53  ;;  %2437 = vmatprep.mubr.msk.f32.mxu0 (!%p2338_p5), %vm2521_vm3, %v2520_v44  ;;  %vm2223_vm4 = vcmp.gt.f32.partialorder (!%p2338_p5), %v2222_v39, 0.5  ;;  %v2137_v14 = vld [vmem:[%s3096_s18] sm:$0xff] (!%p2338_p5) }
 0x246   : > { %1905 = vperm.xlu0 (!%p2338_p5), %2496, %v1902_v51   ;;  %2469 = vmatprep.subr.bf16.mxu0 (!%p2338_p5), %v2523_v1  ;;  %v2224_v27 = vsel (!%p2338_p5), %vm2223_vm4, 1, %v2522_v53  ;;  %v2476_v45 = vpack.c.bf16 (!%p2338_p5), %v2138_v48, %v2137_v14  ;;  %v2344_v38 = vld [vmem:[%s3097_s19] ss:$0 sm:$0xff] (!%p2338_p5) }
 0x247   : > { %2472 = vmatprep.subr.bf16.mxu1 (!%p2338_p5), %v2523_v1  ;;  %2444 = vmatprep.mubr.msk.f32.mxu1 (!%p2338_p5), %vm2521_vm3, %v2520_v44 }
 0x248   : > { %2471 = vmatpush3.bf16.msra.mxu0 %v2470_v30  ;;  %2497 = vset.pattern.permute.xlu1 %v2522_v53 }
 0x249   : > { %2475 = vmatprep.subr.bf16.mxu0 %v2523_v1  ;;  %2474 = vmatpush3.bf16.msra.mxu1 %v2473_v3 }
 0x24a   : > { %1986 = vperm.xlu0 %2496, %v1983_v32   ;;  %2226 = vperm.xlu1 %2497, %v2224_v27  }
 0x24c   : > { %2445 = vmatmul.mubr.msk.f32.vlgmr.msra.gmra.mrb[2].mxu1 %vm716_vm1, %v2702_v24 }
 0x2c5   : > { %v1906_v52 = vpop.permute.xlu0 %1905 }
 0x2c9   : > { %v1987_v29 = vpop.permute.xlu0 %1986  ;;  %v2227_v15 = vpop.permute.xlu1 %2226 }
 0x2ca   : > { %vm2228_vm5 = vcmp.eq.s32.totalorder %v2227_v15, 1 }
 0x317   : > { %v1898_v41 = vpop.f32.mrb[0].mxu0  ;;  %v1979_v60 = vpop.f32.mrb[0].mxu1 }
 0x318   : > { %v1908_v4 = vmul.f32 %v1906_v52, %v1898_v41  ;;  %v2427_v49 = vpop.f32.mrb[1].mxu0  ;;  %v2432_v59 = vpop.f32.mrb[1].mxu1  ;;  %v1989_v31 = vmul.f32 %v1987_v29, %v1979_v60 }
 0x31a   : > { %2438 = vmatmul.mubr.msk.f32.vlgmr.msra.gmra.mrb[2].mxu0 %vm716_vm1, %v1908_v4 }
 0x31b   : > { %2477 = vmatpush3.bf16.msra.mxu0 %v2476_v45  ;;  %2451 = vmatprep.mubr.msk.f32.mxu0 %vm2521_vm3, %v2520_v44 }
 0x31e   : > { %2452 = vmatmul.mubr.msk.f32.vlgmr.msra.gmra.mrb[4].mxu0 %vm716_vm1, %v1989_v31 }
 0x31f   : > { %v2133_v62 = vpop.f32.mrb[2].mxu1 }
 0x320   : > { %v2446_v40 = vpop.f32.mrb[3].mxu1 }
 0x3ed   : > { %v2063_v33 = vpop.f32.mrb[2].mxu0 }
 0x3ee   : > { %v2134_v36 = vadd.f32 %v2133_v62, %v2063_v33  ;;  %v2439_v56 = vpop.f32.mrb[3].mxu0 }
 0x3f1   : > { %v2208_v54 = vpop.f32.mrb[4].mxu0 }
 0x3f2   : > { %v2212_v55 = vadd.f32 %v2208_v54, %v2134_v36  ;;  %v2453_v34 = vpop.f32.mrb[5].mxu0 }
 0x3f4   : > { %v2220_v26 = vadd.f32 %v2344_v38, %v2212_v55 }
 0x3f6   : > { %v2221_v37 = vmax.f32 %v2220_v26, 0.0 }
 0x3f8   : > { %v2229_v57 = vsel %vm2228_vm5, %v2221_v37, %v2702_v24 }
 0x3f9   : > { %2230 = vst.msk [vmem:[#allocation2 + $0x8] sm:$0xff] %vm716_vm1, %v2229_v57 }
 0x3fa PF: > { %s30_s1 = sadd.s32 1, %s2514_s1  }
 0x3fb   : > { %p27_p6 = scmp.ge.s32.totalorder %s30_s1, 4  }
 0x3fd   :  { %29 = sbr.rel (!%p27_p6) target bundleno = 6 (0x6), region = 335 }
 0x404   :  { %2242 = vsyncmov [#allocation8] }
 0x407   :  { %s2243_s30 = vpop.sfrf %2242 }
 0x408   :  { %p2347_p7 = scmp.ne.s32.totalorder %s2243_s30, 0 }
 0x40a   :  { %2247 = shalt.err (%p2347_p7)  }
 0x40b   :  { %2249 = vsyncmov [#allocation8 + $0x1] }
 0x40e   :  { %s2250_s0 = vpop.sfrf %2249 }
 0x40f   :  { %p2348_p8 = scmp.ne.s32.totalorder %s2250_s0, 0 }
 0x411   :  { %2254 = shalt.err (%p2348_p8)  }
 0x412   :  { %2256 = vsyncmov [#allocation8 + $0x2] }
 0x415   :  { %s2257_s21 = vpop.sfrf %2256 }
 0x416   :  { %p2349_p9 = scmp.ne.s32.totalorder %s2257_s21, 0 }
 0x418   :  { %2261 = shalt.err (%p2349_p9)  }
 0x419   :  { %2263 = vsyncmov [#allocation8 + $0x3] }
 0x41c   :  { %s2264_s23 = vpop.sfrf %2263 }
 0x41d   :  { %p2350_p10 = scmp.ne.s32.totalorder %s2264_s23, 0 }
 0x41f   :  { %2268 = shalt.err (%p2350_p10)  }
 0x420   :  { %2270 = vsyncmov [#allocation8 + $0x4] }
 0x423   :  { %s2271_s22 = vpop.sfrf %2270 }
 0x424   :  { %p2351_p11 = scmp.ne.s32.totalorder %s2271_s22, 0 }
 0x426   :  { %2275 = shalt.err (%p2351_p11)  }

</bundles_post_ra>
